<compile_context>
chip_gen: v7x
topology: tpu7x:2x2x1
jax: 0.10.0
libtpu: 0.0.40
codegen_flags: <defaults>
</compile_context>

<pallas_src>
import functools

import jax
import jax.numpy as jnp
from jax.experimental import pallas as pl
from jax.experimental.pallas import tpu as pltpu


def _message_embedding_kernel(feat_ref, msg_ref, w1t_ref, w2t_ref, cw_ref,
                              b1_ref, b2_ref, cb_ref, gamma_ref, beta_ref,
                              out_ref, *, B, C, H, W):
    """Whole forward pass in one invocation (no grid; everything fits in VMEM).

    feat_ref  : (B*C, H*W) f32   NCHW features, batch folded onto sublanes
    msg_ref   : (B, M)     f32
    w1t_ref   : (2C, M)    bf16  message_expand Linear-1 weight, (out, in)
    w2t_ref   : (C, 2C)    bf16  message_expand Linear-2 weight, (out, in)
    cw_ref    : (9, C, C)  bf16  conv weight, [ky*3+kx, c_out, c_in]
    b1/b2/cb/gamma/beta_ref : (2C or C, 1) f32 column vectors
    out_ref   : (B*C, H*W) f32   lane-dense output slab (wrapper reshapes)
    """
    HW = H * W
    n_pix = B * HW

    # ---- message_expand: Linear -> ReLU -> Linear -> Tanh (channels-major) ---
    # Tiny matmuls stay on the MXU (otherwise idle); contraction is
    # last-dim-vs-last-dim so no operand is materialized transposed.
    h = jax.lax.dot_general(
        w1t_ref[...], msg_ref[...].astype(jnp.bfloat16),
        dimension_numbers=(((1,), (1,)), ((), ())),
        preferred_element_type=jnp.float32) + b1_ref[...]              # (2C, B)
    h = jnp.maximum(h, 0.0)
    m_t = jnp.tanh(
        jnp.dot(w2t_ref[...], h.astype(jnp.bfloat16),
                preferred_element_type=jnp.float32) + b2_ref[...])     # (C, B)

    # ---- fuse message (hoisted scale, single broadcast-add on the slab) ------
    m_scaled = m_t * 0.1                                               # (C, B)
    # (B*C, 1) column: row b*C + c  <-  m_scaled[c, b]
    m_col = jnp.concatenate([m_scaled[:, b:b + 1] for b in range(B)], axis=0)
    fused = feat_ref[...] + m_col                                      # (B*C, HW)

    # ---- 3x3 'same' conv: 9 in-register rolled taps, accumulating matmuls ----
    # Tap (ky, kx) of output pixel q reads fused pixel q + (ky-1)*W + (kx-1).
    # pltpu.roll (circular, per-row) supplies that flat shift; the four border
    # masks zero exactly the positions where the true conv would have read the
    # zero pad (which are exactly the positions where the roll wrapped around
    # or crossed an image row).
    q = jax.lax.broadcasted_iota(jnp.int32, (B * C, HW), 1)   # pixel idx in image
    x = q % W
    ok_left = x > 0               # source column x-1 exists
    ok_right = x < (W - 1)        # source column x+1 exists
    ok_top = q >= W               # source row y-1 exists
    ok_bot = q < (HW - W)         # source row y+1 exists

    accs = [jnp.zeros((C, HW), jnp.float32) for _ in range(B)]
    for ky in range(3):
        for kx in range(3):
            s = (ky - 1) * W + (kx - 1)
            tap = fused if s == 0 else pltpu.roll(fused, shift=(-s) % HW, axis=1)
            m = None
            if ky == 0:
                m = ok_top
            elif ky == 2:
                m = ok_bot
            if kx == 0:
                m = ok_left if m is None else (m & ok_left)
            elif kx == 2:
                m = ok_right if m is None else (m & ok_right)
            if m is not None:
                tap = jnp.where(m, tap, 0.0)
            tap_bf = tap.astype(jnp.bfloat16)                          # (B*C, HW)
            w_tap = cw_ref[ky * 3 + kx]                                # (C, C) bf16
            # The batch is split only here (the contraction is over c_in).
            # NOTE(v7x): these back-to-back dots accumulate natively in the MRB.
            for b in range(B):
                accs[b] = accs[b] + jnp.dot(
                    w_tap, tap_bf[b * C:(b + 1) * C, :],
                    preferred_element_type=jnp.float32)                # (C, HW)

    cb_bc = jnp.concatenate([cb_ref[...]] * B, axis=0)                 # (B*C, 1)
    y = jnp.concatenate(accs, axis=0) + cb_bc                          # (B*C, HW)

    # ---- BatchNorm2d (training-mode batch stats, biased var) + ReLU ----------
    # Per-channel stats: lane-sum per row, then fold the B batch rows.
    # Single-pass E[x^2]-E[x]^2 with clamp (cannot NaN; fine at test tolerance).
    # TODO(synk): running_mean/running_var buffer updates are not modeled (they
    # do not affect the forward output).
    row_sum = jnp.sum(y, axis=1, keepdims=True)                        # (B*C, 1)
    row_sq = jnp.sum(y * y, axis=1, keepdims=True)                     # (B*C, 1)
    ch_sum = row_sum[0:C]
    ch_sq = row_sq[0:C]
    for b in range(1, B):
        ch_sum = ch_sum + row_sum[b * C:(b + 1) * C]
        ch_sq = ch_sq + row_sq[b * C:(b + 1) * C]
    inv_n = 1.0 / float(n_pix)
    mean = ch_sum * inv_n                                              # (C, 1)
    var = jnp.maximum(ch_sq * inv_n - mean * mean, 0.0)
    scale = jax.lax.rsqrt(var + 1e-5) * gamma_ref[...]                 # (C, 1)
    shift = beta_ref[...] - mean * scale
    scale_bc = jnp.concatenate([scale] * B, axis=0)                    # (B*C, 1)
    shift_bc = jnp.concatenate([shift] * B, axis=0)

    # ---- one lane-dense store of the whole slab ------------------------------
    out_ref[...] = jnp.maximum(y * scale_bc + shift_bc, 0.0)


def pack_params(p):
    """One-time host-side re-layout of the module parameters.

    Matmul weights go to bf16 (out, in)-major; the conv weight becomes one
    aligned (C, C) tile per 3x3 tap; 1-D parameters become (n, 1) f32 columns
    so the kernel only ever does full-ref loads for parameters.
    """
    C = p["gamma"].shape[-1]

    def col(v):
        return jnp.asarray(v, jnp.float32).reshape(-1, 1)

    return {
        "w1t": jnp.asarray(p["w1"]).T.astype(jnp.bfloat16),            # (2C, M)
        "w2t": jnp.asarray(p["w2"]).T.astype(jnp.bfloat16),            # (C, 2C)
        # HWIO (3,3,Cin,Cout) -> (ky*3+kx, Cout, Cin)
        "cw": jnp.transpose(jnp.asarray(p["conv_w"]), (0, 1, 3, 2))
                 .reshape(9, C, C).astype(jnp.bfloat16),
        "b1": col(p["b1"]), "b2": col(p["b2"]), "cb": col(p["conv_b"]),
        "gamma": col(p["gamma"]), "beta": col(p["beta"]),
    }


@jax.jit
def message_embedding_forward(features_nchw, message, packed):
    """features: (B, C, H, W) NCHW, message: (B, message_dim). Returns NCHW."""
    B, C, H, W = features_nchw.shape
    HW = H * W
    feat = features_nchw.reshape(B * C, HW).astype(jnp.float32)    # free reshape
    kernel = functools.partial(_message_embedding_kernel, B=B, C=C, H=H, W=W)

    args = (feat, message.astype(jnp.float32),
            packed["w1t"], packed["w2t"], packed["cw"],
            packed["b1"], packed["b2"], packed["cb"],
            packed["gamma"], packed["beta"])

    # NOTE(perf): one ungridded invocation is deliberate at these sizes — per
    # grid-step overhead (~0.35 us) exceeds the ~0.15 us of total HBM traffic.
    # For production B/H, add a grid over B (or H row-tiles) with
    # dimension_semantics=("parallel",) (engages v7x's second TensorCore), a
    # two-phase BatchNorm (per-tile sum/sumsq + finalize), and re-derive sizes
    # against v7x's 64 MiB VMEM.
    out = pl.pallas_call(
        kernel,
        out_shape=jax.ShapeDtypeStruct((B * C, HW), jnp.float32),
        in_specs=[pl.BlockSpec(memory_space=pltpu.MemorySpace.VMEM)] * len(args),
        out_specs=pl.BlockSpec(memory_space=pltpu.MemorySpace.VMEM),
    )(*args)
    return out.reshape(B, C, H, W)


def reference_forward(features, message, p):
    """Pure-JAX reference, NCHW, mirrors the PyTorch forward (training-mode BN)."""
    h = jnp.maximum(message @ p["w1"] + p["b1"], 0.0)
    m = jnp.tanh(h @ p["w2"] + p["b2"])                      # (B, C)
    fused = features + m[:, :, None, None] * 0.1             # NCHW
    w_oihw = jnp.transpose(p["conv_w"], (3, 2, 0, 1))        # HWIO -> OIHW
    y = jax.lax.conv_general_dilated(
        fused, w_oihw, window_strides=(1, 1), padding=((1, 1), (1, 1)),
        dimension_numbers=("NCHW", "OIHW", "NCHW"))
    y = y + p["conv_b"].reshape(1, -1, 1, 1)
    mean = jnp.mean(y, axis=(0, 2, 3), keepdims=True)
    var = jnp.mean((y - mean) ** 2, axis=(0, 2, 3), keepdims=True)
    yn = (y - mean) / jnp.sqrt(var + 1e-5)
    out = yn * p["gamma"].reshape(1, -1, 1, 1) + p["beta"].reshape(1, -1, 1, 1)
    return jnp.maximum(out, 0.0)


if __name__ == "__main__":
    B, MSG_DIM, FEAT_DIM, H, W = 2, 16, 32, 16, 16

    key = jax.random.PRNGKey(0)
    ks = jax.random.split(key, 10)

    def u(k, shape, scale):
        return jax.random.uniform(k, shape, jnp.float32, -scale, scale)

    # Deterministic synthetic parameters (shapes from MessageEmbedding.__init__),
    # Linear/Conv weights in (in, out) / HWIO orientation for the JAX reference.
    params = {
        "w1": u(ks[0], (MSG_DIM, 2 * FEAT_DIM), 1.0 / MSG_DIM ** 0.5),
        "b1": u(ks[1], (1, 2 * FEAT_DIM), 1.0 / MSG_DIM ** 0.5),
        "w2": u(ks[2], (2 * FEAT_DIM, FEAT_DIM), 1.0 / (2 * FEAT_DIM) ** 0.5),
        "b2": u(ks[3], (1, FEAT_DIM), 1.0 / (2 * FEAT_DIM) ** 0.5),
        "conv_w": u(ks[4], (3, 3, FEAT_DIM, FEAT_DIM), 1.0 / (9 * FEAT_DIM) ** 0.5),
        "conv_b": u(ks[5], (1, FEAT_DIM), 1.0 / (9 * FEAT_DIM) ** 0.5),
        "gamma": 1.0 + 0.1 * u(ks[6], (1, FEAT_DIM), 1.0),
        "beta": 0.1 * u(ks[7], (1, FEAT_DIM), 1.0),
    }

    features = jax.random.normal(ks[8], (B, FEAT_DIM, H, W), jnp.float32)  # NCHW
    message = jax.random.bernoulli(ks[9], 0.5, (B, MSG_DIM)).astype(jnp.float32)

    packed = pack_params(params)                      # one-time host-side re-layout
    out = message_embedding_forward(features, message, packed)
    out = jax.block_until_ready(out)

    ref = reference_forward(features, message, params)
    err = float(jnp.max(jnp.abs(out - ref)))
    assert out.shape == (B, FEAT_DIM, H, W), out.shape
    assert err < 2e-2, f"max abs error too large: {err}"
    print("KERNEL_OK")
</pallas_src>

<mosaic_0001>
module attributes {stable_mosaic.version = 11 : i64} {
  func.func @_message_embedding_kernel(%arg0: memref<64x256xf32, #tpu.memory_space<vmem>>, %arg1: memref<2x16xf32, #tpu.memory_space<vmem>>, %arg2: memref<64x16xbf16, #tpu.memory_space<vmem>>, %arg3: memref<32x64xbf16, #tpu.memory_space<vmem>>, %arg4: memref<9x32x32xbf16, #tpu.memory_space<vmem>>, %arg5: memref<64x1xf32, #tpu.memory_space<vmem>>, %arg6: memref<32x1xf32, #tpu.memory_space<vmem>>, %arg7: memref<32x1xf32, #tpu.memory_space<vmem>>, %arg8: memref<32x1xf32, #tpu.memory_space<vmem>>, %arg9: memref<32x1xf32, #tpu.memory_space<vmem>>, %arg10: memref<64x256xf32, #tpu.memory_space<vmem>>) attributes {dimension_semantics = [], scalar_prefetch = 0 : i64, scratch_operands = 0 : i64, tpu.core_type = #tpu.core_type<tc>} {
    %c0 = arith.constant 0 : index
    %c0_0 = arith.constant 0 : index
    %0 = vector.load %arg2[%c0, %c0_0] : memref<64x16xbf16, #tpu.memory_space<vmem>>, vector<64x16xbf16>
    %c0_1 = arith.constant 0 : index
    %c0_2 = arith.constant 0 : index
    %1 = vector.load %arg1[%c0_1, %c0_2] : memref<2x16xf32, #tpu.memory_space<vmem>>, vector<2x16xf32>
    %2 = arith.truncf %1 : vector<2x16xf32> to vector<2x16xbf16>
    %cst = arith.constant dense<0.000000e+00> : vector<64x2xf32>
    %3 = tpu.matmul %0, %2, %cst {dimension_numbers = #tpu.dot_dimension_numbers<[1], [1], [0], [0], [0, 0, 1, 0], [], []>} : vector<64x16xbf16>, vector<2x16xbf16>, vector<64x2xf32> -> vector<64x2xf32>
    %c0_3 = arith.constant 0 : index
    %c0_4 = arith.constant 0 : index
    %4 = vector.load %arg5[%c0_3, %c0_4] : memref<64x1xf32, #tpu.memory_space<vmem>>, vector<64x1xf32>
    %5 = vector.broadcast %4 : vector<64x1xf32> to vector<64x2xf32>
    %6 = arith.addf %3, %5 : vector<64x2xf32>
    %cst_5 = arith.constant 0.000000e+00 : f32
    %7 = vector.broadcast %cst_5 : f32 to vector<64x2xf32>
    %8 = arith.maximumf %6, %7 : vector<64x2xf32>
    %c0_6 = arith.constant 0 : index
    %c0_7 = arith.constant 0 : index
    %9 = vector.load %arg3[%c0_6, %c0_7] : memref<32x64xbf16, #tpu.memory_space<vmem>>, vector<32x64xbf16>
    %10 = arith.truncf %8 : vector<64x2xf32> to vector<64x2xbf16>
    %cst_8 = arith.constant dense<0.000000e+00> : vector<32x2xf32>
    %11 = tpu.matmul %9, %10, %cst_8 {dimension_numbers = #tpu.dot_dimension_numbers<[1], [0], [0], [1], [0, 0, 1, 1], [], []>} : vector<32x64xbf16>, vector<64x2xbf16>, vector<32x2xf32> -> vector<32x2xf32>
    %c0_9 = arith.constant 0 : index
    %c0_10 = arith.constant 0 : index
    %12 = vector.load %arg6[%c0_9, %c0_10] : memref<32x1xf32, #tpu.memory_space<vmem>>, vector<32x1xf32>
    %13 = vector.broadcast %12 : vector<32x1xf32> to vector<32x2xf32>
    %14 = arith.addf %11, %13 : vector<32x2xf32>
    %15 = math.tanh %14 : vector<32x2xf32>
    %cst_11 = arith.constant 1.000000e-01 : f32
    %16 = vector.broadcast %cst_11 : f32 to vector<32x2xf32>
    %17 = arith.mulf %15, %16 : vector<32x2xf32>
    %18 = vector.extract_strided_slice %17 {offsets = [0, 0], sizes = [32, 1], strides = [1, 1]} : vector<32x2xf32> to vector<32x1xf32>
    %19 = vector.extract_strided_slice %17 {offsets = [0, 1], sizes = [32, 1], strides = [1, 1]} : vector<32x2xf32> to vector<32x1xf32>
    %20 = tpu.concatenate %18, %19 in 0 : vector<32x1xf32>, vector<32x1xf32> -> vector<64x1xf32>
    %c0_12 = arith.constant 0 : index
    %c0_13 = arith.constant 0 : index
    %21 = vector.load %arg0[%c0_12, %c0_13] : memref<64x256xf32, #tpu.memory_space<vmem>>, vector<64x256xf32>
    %22 = vector.broadcast %20 : vector<64x1xf32> to vector<64x256xf32>
    %23 = arith.addf %21, %22 : vector<64x256xf32>
    %24 = tpu.iota {dimensions = array<i32: 1>} : vector<64x256xi32>
    %c16_i32 = arith.constant 16 : i32
    %c0_i32 = arith.constant 0 : i32
    %25 = arith.cmpi eq, %c16_i32, %c0_i32 : i32
    %c1_i32 = arith.constant 1 : i32
    %26 = arith.select %25, %c1_i32, %c16_i32 : i32
    %27 = vector.broadcast %26 : i32 to vector<64x256xi32>
    %28 = arith.remsi %24, %27 : vector<64x256xi32>
    %c0_i32_14 = arith.constant 0 : i32
    %29 = vector.broadcast %c0_i32_14 : i32 to vector<64x256xi32>
    %30 = arith.cmpi ne, %28, %29 : vector<64x256xi32>
    %c0_i32_15 = arith.constant 0 : i32
    %31 = vector.broadcast %c0_i32_15 : i32 to vector<64x256xi32>
    %32 = arith.cmpi slt, %28, %31 : vector<64x256xi32>
    %c0_i32_16 = arith.constant 0 : i32
    %33 = arith.cmpi slt, %26, %c0_i32_16 : i32
    %34 = vector.broadcast %33 : i1 to vector<64x256xi1>
    %35 = vector.broadcast %34 : vector<64x256xi1> to vector<64x256xi1>
    %36 = arith.xori %32, %35 : vector<64x256xi1>
    %37 = arith.andi %36, %30 : vector<64x256xi1>
    %38 = vector.broadcast %26 : i32 to vector<64x256xi32>
    %39 = arith.addi %28, %38 : vector<64x256xi32>
    %40 = arith.select %37, %39, %28 : vector<64x256xi1>, vector<64x256xi32>
    %c0_i32_17 = arith.constant 0 : i32
    %41 = vector.broadcast %c0_i32_17 : i32 to vector<64x256xi32>
    %42 = arith.cmpi sgt, %40, %41 : vector<64x256xi32>
    %c15_i32 = arith.constant 15 : i32
    %43 = vector.broadcast %c15_i32 : i32 to vector<64x256xi32>
    %44 = arith.cmpi slt, %40, %43 : vector<64x256xi32>
    %c16_i32_18 = arith.constant 16 : i32
    %45 = vector.broadcast %c16_i32_18 : i32 to vector<64x256xi32>
    %46 = arith.cmpi sge, %24, %45 : vector<64x256xi32>
    %c240_i32 = arith.constant 240 : i32
    %47 = vector.broadcast %c240_i32 : i32 to vector<64x256xi32>
    %48 = arith.cmpi slt, %24, %47 : vector<64x256xi32>
    %cst_19 = arith.constant 0.000000e+00 : f32
    %49 = vector.broadcast %cst_19 : f32 to vector<32x256xf32>
    %cst_20 = arith.constant 0.000000e+00 : f32
    %50 = vector.broadcast %cst_20 : f32 to vector<32x256xf32>
    %c17_i32 = arith.constant 17 : i32
    %51 = tpu.dynamic_rotate %23 by %c17_i32 dim 1 : vector<64x256xf32>, i32 -> vector<64x256xf32>
    %52 = arith.andi %46, %42 : vector<64x256xi1>
    %cst_21 = arith.constant 0.000000e+00 : f32
    %53 = vector.broadcast %cst_21 : f32 to vector<64x256xf32>
    %54 = arith.select %52, %51, %53 : vector<64x256xi1>, vector<64x256xf32>
    %55 = arith.truncf %54 : vector<64x256xf32> to vector<64x256xbf16>
    %c0_22 = arith.constant 0 : index
    %c0_23 = arith.constant 0 : index
    %c0_24 = arith.constant 0 : index
    %56 = vector.load %arg4[%c0_22, %c0_23, %c0_24] : memref<9x32x32xbf16, #tpu.memory_space<vmem>>, vector<1x32x32xbf16>
    %57 = vector.shape_cast %56 : vector<1x32x32xbf16> to vector<32x32xbf16>
    %58 = vector.extract_strided_slice %55 {offsets = [0, 0], sizes = [32, 256], strides = [1, 1]} : vector<64x256xbf16> to vector<32x256xbf16>
    %cst_25 = arith.constant dense<0.000000e+00> : vector<32x256xf32>
    %59 = tpu.matmul %57, %58, %cst_25 {dimension_numbers = #tpu.dot_dimension_numbers<[1], [0], [0], [1], [0, 0, 1, 1], [], []>} : vector<32x32xbf16>, vector<32x256xbf16>, vector<32x256xf32> -> vector<32x256xf32>
    %60 = arith.addf %49, %59 : vector<32x256xf32>
    %61 = vector.extract_strided_slice %55 {offsets = [32, 0], sizes = [32, 256], strides = [1, 1]} : vector<64x256xbf16> to vector<32x256xbf16>
    %cst_26 = arith.constant dense<0.000000e+00> : vector<32x256xf32>
    %62 = tpu.matmul %57, %61, %cst_26 {dimension_numbers = #tpu.dot_dimension_numbers<[1], [0], [0], [1], [0, 0, 1, 1], [], []>} : vector<32x32xbf16>, vector<32x256xbf16>, vector<32x256xf32> -> vector<32x256xf32>
    %63 = arith.addf %50, %62 : vector<32x256xf32>
    %c16_i32_27 = arith.constant 16 : i32
    %64 = tpu.dynamic_rotate %23 by %c16_i32_27 dim 1 : vector<64x256xf32>, i32 -> vector<64x256xf32>
    %cst_28 = arith.constant 0.000000e+00 : f32
    %65 = vector.broadcast %cst_28 : f32 to vector<64x256xf32>
    %66 = arith.select %46, %64, %65 : vector<64x256xi1>, vector<64x256xf32>
    %67 = arith.truncf %66 : vector<64x256xf32> to vector<64x256xbf16>
    %c1 = arith.constant 1 : index
    %c0_29 = arith.constant 0 : index
    %c0_30 = arith.constant 0 : index
    %68 = vector.load %arg4[%c1, %c0_29, %c0_30] : memref<9x32x32xbf16, #tpu.memory_space<vmem>>, vector<1x32x32xbf16>
    %69 = vector.shape_cast %68 : vector<1x32x32xbf16> to vector<32x32xbf16>
    %70 = vector.extract_strided_slice %67 {offsets = [0, 0], sizes = [32, 256], strides = [1, 1]} : vector<64x256xbf16> to vector<32x256xbf16>
    %cst_31 = arith.constant dense<0.000000e+00> : vector<32x256xf32>
    %71 = tpu.matmul %69, %70, %cst_31 {dimension_numbers = #tpu.dot_dimension_numbers<[1], [0], [0], [1], [0, 0, 1, 1], [], []>} : vector<32x32xbf16>, vector<32x256xbf16>, vector<32x256xf32> -> vector<32x256xf32>
    %72 = arith.addf %60, %71 : vector<32x256xf32>
    %73 = vector.extract_strided_slice %67 {offsets = [32, 0], sizes = [32, 256], strides = [1, 1]} : vector<64x256xbf16> to vector<32x256xbf16>
    %cst_32 = arith.constant dense<0.000000e+00> : vector<32x256xf32>
    %74 = tpu.matmul %69, %73, %cst_32 {dimension_numbers = #tpu.dot_dimension_numbers<[1], [0], [0], [1], [0, 0, 1, 1], [], []>} : vector<32x32xbf16>, vector<32x256xbf16>, vector<32x256xf32> -> vector<32x256xf32>
    %75 = arith.addf %63, %74 : vector<32x256xf32>
    %c15_i32_33 = arith.constant 15 : i32
    %76 = tpu.dynamic_rotate %23 by %c15_i32_33 dim 1 : vector<64x256xf32>, i32 -> vector<64x256xf32>
    %77 = arith.andi %46, %44 : vector<64x256xi1>
    %cst_34 = arith.constant 0.000000e+00 : f32
    %78 = vector.broadcast %cst_34 : f32 to vector<64x256xf32>
    %79 = arith.select %77, %76, %78 : vector<64x256xi1>, vector<64x256xf32>
    %80 = arith.truncf %79 : vector<64x256xf32> to vector<64x256xbf16>
    %c2 = arith.constant 2 : index
    %c0_35 = arith.constant 0 : index
    %c0_36 = arith.constant 0 : index
    %81 = vector.load %arg4[%c2, %c0_35, %c0_36] : memref<9x32x32xbf16, #tpu.memory_space<vmem>>, vector<1x32x32xbf16>
    %82 = vector.shape_cast %81 : vector<1x32x32xbf16> to vector<32x32xbf16>
    %83 = vector.extract_strided_slice %80 {offsets = [0, 0], sizes = [32, 256], strides = [1, 1]} : vector<64x256xbf16> to vector<32x256xbf16>
    %cst_37 = arith.constant dense<0.000000e+00> : vector<32x256xf32>
    %84 = tpu.matmul %82, %83, %cst_37 {dimension_numbers = #tpu.dot_dimension_numbers<[1], [0], [0], [1], [0, 0, 1, 1], [], []>} : vector<32x32xbf16>, vector<32x256xbf16>, vector<32x256xf32> -> vector<32x256xf32>
    %85 = arith.addf %72, %84 : vector<32x256xf32>
    %86 = vector.extract_strided_slice %80 {offsets = [32, 0], sizes = [32, 256], strides = [1, 1]} : vector<64x256xbf16> to vector<32x256xbf16>
    %cst_38 = arith.constant dense<0.000000e+00> : vector<32x256xf32>
    %87 = tpu.matmul %82, %86, %cst_38 {dimension_numbers = #tpu.dot_dimension_numbers<[1], [0], [0], [1], [0, 0, 1, 1], [], []>} : vector<32x32xbf16>, vector<32x256xbf16>, vector<32x256xf32> -> vector<32x256xf32>
    %88 = arith.addf %75, %87 : vector<32x256xf32>
    %c1_i32_39 = arith.constant 1 : i32
    %89 = tpu.dynamic_rotate %23 by %c1_i32_39 dim 1 : vector<64x256xf32>, i32 -> vector<64x256xf32>
    %cst_40 = arith.constant 0.000000e+00 : f32
    %90 = vector.broadcast %cst_40 : f32 to vector<64x256xf32>
    %91 = arith.select %42, %89, %90 : vector<64x256xi1>, vector<64x256xf32>
    %92 = arith.truncf %91 : vector<64x256xf32> to vector<64x256xbf16>
    %c3 = arith.constant 3 : index
    %c0_41 = arith.constant 0 : index
    %c0_42 = arith.constant 0 : index
    %93 = vector.load %arg4[%c3, %c0_41, %c0_42] : memref<9x32x32xbf16, #tpu.memory_space<vmem>>, vector<1x32x32xbf16>
    %94 = vector.shape_cast %93 : vector<1x32x32xbf16> to vector<32x32xbf16>
    %95 = vector.extract_strided_slice %92 {offsets = [0, 0], sizes = [32, 256], strides = [1, 1]} : vector<64x256xbf16> to vector<32x256xbf16>
    %cst_43 = arith.constant dense<0.000000e+00> : vector<32x256xf32>
    %96 = tpu.matmul %94, %95, %cst_43 {dimension_numbers = #tpu.dot_dimension_numbers<[1], [0], [0], [1], [0, 0, 1, 1], [], []>} : vector<32x32xbf16>, vector<32x256xbf16>, vector<32x256xf32> -> vector<32x256xf32>
    %97 = arith.addf %85, %96 : vector<32x256xf32>
    %98 = vector.extract_strided_slice %92 {offsets = [32, 0], sizes = [32, 256], strides = [1, 1]} : vector<64x256xbf16> to vector<32x256xbf16>
    %cst_44 = arith.constant dense<0.000000e+00> : vector<32x256xf32>
    %99 = tpu.matmul %94, %98, %cst_44 {dimension_numbers = #tpu.dot_dimension_numbers<[1], [0], [0], [1], [0, 0, 1, 1], [], []>} : vector<32x32xbf16>, vector<32x256xbf16>, vector<32x256xf32> -> vector<32x256xf32>
    %100 = arith.addf %88, %99 : vector<32x256xf32>
    %101 = arith.truncf %23 : vector<64x256xf32> to vector<64x256xbf16>
    %c4 = arith.constant 4 : index
    %c0_45 = arith.constant 0 : index
    %c0_46 = arith.constant 0 : index
    %102 = vector.load %arg4[%c4, %c0_45, %c0_46] : memref<9x32x32xbf16, #tpu.memory_space<vmem>>, vector<1x32x32xbf16>
    %103 = vector.shape_cast %102 : vector<1x32x32xbf16> to vector<32x32xbf16>
    %104 = vector.extract_strided_slice %101 {offsets = [0, 0], sizes = [32, 256], strides = [1, 1]} : vector<64x256xbf16> to vector<32x256xbf16>
    %cst_47 = arith.constant dense<0.000000e+00> : vector<32x256xf32>
    %105 = tpu.matmul %103, %104, %cst_47 {dimension_numbers = #tpu.dot_dimension_numbers<[1], [0], [0], [1], [0, 0, 1, 1], [], []>} : vector<32x32xbf16>, vector<32x256xbf16>, vector<32x256xf32> -> vector<32x256xf32>
    %106 = arith.addf %97, %105 : vector<32x256xf32>
    %107 = vector.extract_strided_slice %101 {offsets = [32, 0], sizes = [32, 256], strides = [1, 1]} : vector<64x256xbf16> to vector<32x256xbf16>
    %cst_48 = arith.constant dense<0.000000e+00> : vector<32x256xf32>
    %108 = tpu.matmul %103, %107, %cst_48 {dimension_numbers = #tpu.dot_dimension_numbers<[1], [0], [0], [1], [0, 0, 1, 1], [], []>} : vector<32x32xbf16>, vector<32x256xbf16>, vector<32x256xf32> -> vector<32x256xf32>
    %109 = arith.addf %100, %108 : vector<32x256xf32>
    %c255_i32 = arith.constant 255 : i32
    %110 = tpu.dynamic_rotate %23 by %c255_i32 dim 1 : vector<64x256xf32>, i32 -> vector<64x256xf32>
    %cst_49 = arith.constant 0.000000e+00 : f32
    %111 = vector.broadcast %cst_49 : f32 to vector<64x256xf32>
    %112 = arith.select %44, %110, %111 : vector<64x256xi1>, vector<64x256xf32>
    %113 = arith.truncf %112 : vector<64x256xf32> to vector<64x256xbf16>
    %c5 = arith.constant 5 : index
    %c0_50 = arith.constant 0 : index
    %c0_51 = arith.constant 0 : index
    %114 = vector.load %arg4[%c5, %c0_50, %c0_51] : memref<9x32x32xbf16, #tpu.memory_space<vmem>>, vector<1x32x32xbf16>
    %115 = vector.shape_cast %114 : vector<1x32x32xbf16> to vector<32x32xbf16>
    %116 = vector.extract_strided_slice %113 {offsets = [0, 0], sizes = [32, 256], strides = [1, 1]} : vector<64x256xbf16> to vector<32x256xbf16>
    %cst_52 = arith.constant dense<0.000000e+00> : vector<32x256xf32>
    %117 = tpu.matmul %115, %116, %cst_52 {dimension_numbers = #tpu.dot_dimension_numbers<[1], [0], [0], [1], [0, 0, 1, 1], [], []>} : vector<32x32xbf16>, vector<32x256xbf16>, vector<32x256xf32> -> vector<32x256xf32>
    %118 = arith.addf %106, %117 : vector<32x256xf32>
    %119 = vector.extract_strided_slice %113 {offsets = [32, 0], sizes = [32, 256], strides = [1, 1]} : vector<64x256xbf16> to vector<32x256xbf16>
    %cst_53 = arith.constant dense<0.000000e+00> : vector<32x256xf32>
    %120 = tpu.matmul %115, %119, %cst_53 {dimension_numbers = #tpu.dot_dimension_numbers<[1], [0], [0], [1], [0, 0, 1, 1], [], []>} : vector<32x32xbf16>, vector<32x256xbf16>, vector<32x256xf32> -> vector<32x256xf32>
    %121 = arith.addf %109, %120 : vector<32x256xf32>
    %c241_i32 = arith.constant 241 : i32
    %122 = tpu.dynamic_rotate %23 by %c241_i32 dim 1 : vector<64x256xf32>, i32 -> vector<64x256xf32>
    %123 = arith.andi %48, %42 : vector<64x256xi1>
    %cst_54 = arith.constant 0.000000e+00 : f32
    %124 = vector.broadcast %cst_54 : f32 to vector<64x256xf32>
    %125 = arith.select %123, %122, %124 : vector<64x256xi1>, vector<64x256xf32>
    %126 = arith.truncf %125 : vector<64x256xf32> to vector<64x256xbf16>
    %c6 = arith.constant 6 : index
    %c0_55 = arith.constant 0 : index
    %c0_56 = arith.constant 0 : index
    %127 = vector.load %arg4[%c6, %c0_55, %c0_56] : memref<9x32x32xbf16, #tpu.memory_space<vmem>>, vector<1x32x32xbf16>
    %128 = vector.shape_cast %127 : vector<1x32x32xbf16> to vector<32x32xbf16>
    %129 = vector.extract_strided_slice %126 {offsets = [0, 0], sizes = [32, 256], strides = [1, 1]} : vector<64x256xbf16> to vector<32x256xbf16>
    %cst_57 = arith.constant dense<0.000000e+00> : vector<32x256xf32>
    %130 = tpu.matmul %128, %129, %cst_57 {dimension_numbers = #tpu.dot_dimension_numbers<[1], [0], [0], [1], [0, 0, 1, 1], [], []>} : vector<32x32xbf16>, vector<32x256xbf16>, vector<32x256xf32> -> vector<32x256xf32>
    %131 = arith.addf %118, %130 : vector<32x256xf32>
    %132 = vector.extract_strided_slice %126 {offsets = [32, 0], sizes = [32, 256], strides = [1, 1]} : vector<64x256xbf16> to vector<32x256xbf16>
    %cst_58 = arith.constant dense<0.000000e+00> : vector<32x256xf32>
    %133 = tpu.matmul %128, %132, %cst_58 {dimension_numbers = #tpu.dot_dimension_numbers<[1], [0], [0], [1], [0, 0, 1, 1], [], []>} : vector<32x32xbf16>, vector<32x256xbf16>, vector<32x256xf32> -> vector<32x256xf32>
    %134 = arith.addf %121, %133 : vector<32x256xf32>
    %c240_i32_59 = arith.constant 240 : i32
    %135 = tpu.dynamic_rotate %23 by %c240_i32_59 dim 1 : vector<64x256xf32>, i32 -> vector<64x256xf32>
    %cst_60 = arith.constant 0.000000e+00 : f32
    %136 = vector.broadcast %cst_60 : f32 to vector<64x256xf32>
    %137 = arith.select %48, %135, %136 : vector<64x256xi1>, vector<64x256xf32>
    %138 = arith.truncf %137 : vector<64x256xf32> to vector<64x256xbf16>
    %c7 = arith.constant 7 : index
    %c0_61 = arith.constant 0 : index
    %c0_62 = arith.constant 0 : index
    %139 = vector.load %arg4[%c7, %c0_61, %c0_62] : memref<9x32x32xbf16, #tpu.memory_space<vmem>>, vector<1x32x32xbf16>
    %140 = vector.shape_cast %139 : vector<1x32x32xbf16> to vector<32x32xbf16>
    %141 = vector.extract_strided_slice %138 {offsets = [0, 0], sizes = [32, 256], strides = [1, 1]} : vector<64x256xbf16> to vector<32x256xbf16>
    %cst_63 = arith.constant dense<0.000000e+00> : vector<32x256xf32>
    %142 = tpu.matmul %140, %141, %cst_63 {dimension_numbers = #tpu.dot_dimension_numbers<[1], [0], [0], [1], [0, 0, 1, 1], [], []>} : vector<32x32xbf16>, vector<32x256xbf16>, vector<32x256xf32> -> vector<32x256xf32>
    %143 = arith.addf %131, %142 : vector<32x256xf32>
    %144 = vector.extract_strided_slice %138 {offsets = [32, 0], sizes = [32, 256], strides = [1, 1]} : vector<64x256xbf16> to vector<32x256xbf16>
    %cst_64 = arith.constant dense<0.000000e+00> : vector<32x256xf32>
    %145 = tpu.matmul %140, %144, %cst_64 {dimension_numbers = #tpu.dot_dimension_numbers<[1], [0], [0], [1], [0, 0, 1, 1], [], []>} : vector<32x32xbf16>, vector<32x256xbf16>, vector<32x256xf32> -> vector<32x256xf32>
    %146 = arith.addf %134, %145 : vector<32x256xf32>
    %c239_i32 = arith.constant 239 : i32
    %147 = tpu.dynamic_rotate %23 by %c239_i32 dim 1 : vector<64x256xf32>, i32 -> vector<64x256xf32>
    %148 = arith.andi %48, %44 : vector<64x256xi1>
    %cst_65 = arith.constant 0.000000e+00 : f32
    %149 = vector.broadcast %cst_65 : f32 to vector<64x256xf32>
    %150 = arith.select %148, %147, %149 : vector<64x256xi1>, vector<64x256xf32>
    %151 = arith.truncf %150 : vector<64x256xf32> to vector<64x256xbf16>
    %c8 = arith.constant 8 : index
    %c0_66 = arith.constant 0 : index
    %c0_67 = arith.constant 0 : index
    %152 = vector.load %arg4[%c8, %c0_66, %c0_67] : memref<9x32x32xbf16, #tpu.memory_space<vmem>>, vector<1x32x32xbf16>
    %153 = vector.shape_cast %152 : vector<1x32x32xbf16> to vector<32x32xbf16>
    %154 = vector.extract_strided_slice %151 {offsets = [0, 0], sizes = [32, 256], strides = [1, 1]} : vector<64x256xbf16> to vector<32x256xbf16>
    %cst_68 = arith.constant dense<0.000000e+00> : vector<32x256xf32>
    %155 = tpu.matmul %153, %154, %cst_68 {dimension_numbers = #tpu.dot_dimension_numbers<[1], [0], [0], [1], [0, 0, 1, 1], [], []>} : vector<32x32xbf16>, vector<32x256xbf16>, vector<32x256xf32> -> vector<32x256xf32>
    %156 = arith.addf %143, %155 : vector<32x256xf32>
    %157 = vector.extract_strided_slice %151 {offsets = [32, 0], sizes = [32, 256], strides = [1, 1]} : vector<64x256xbf16> to vector<32x256xbf16>
    %cst_69 = arith.constant dense<0.000000e+00> : vector<32x256xf32>
    %158 = tpu.matmul %153, %157, %cst_69 {dimension_numbers = #tpu.dot_dimension_numbers<[1], [0], [0], [1], [0, 0, 1, 1], [], []>} : vector<32x32xbf16>, vector<32x256xbf16>, vector<32x256xf32> -> vector<32x256xf32>
    %159 = arith.addf %146, %158 : vector<32x256xf32>
    %c0_70 = arith.constant 0 : index
    %c0_71 = arith.constant 0 : index
    %160 = vector.load %arg7[%c0_70, %c0_71] : memref<32x1xf32, #tpu.memory_space<vmem>>, vector<32x1xf32>
    %161 = tpu.concatenate %160, %160 in 0 : vector<32x1xf32>, vector<32x1xf32> -> vector<64x1xf32>
    %162 = tpu.concatenate %156, %159 in 0 : vector<32x256xf32>, vector<32x256xf32> -> vector<64x256xf32>
    %163 = vector.broadcast %161 : vector<64x1xf32> to vector<64x256xf32>
    %164 = arith.addf %162, %163 : vector<64x256xf32>
    %cst_72 = arith.constant dense<0.000000e+00> : vector<64xf32>
    %165 = vector.multi_reduction <add>, %164, %cst_72 [1] : vector<64x256xf32> to vector<64xf32>
    %166 = vector.shape_cast %165 : vector<64xf32> to vector<64x1xf32>
    %167 = arith.mulf %164, %164 : vector<64x256xf32>
    %cst_73 = arith.constant dense<0.000000e+00> : vector<64xf32>
    %168 = vector.multi_reduction <add>, %167, %cst_73 [1] : vector<64x256xf32> to vector<64xf32>
    %169 = vector.shape_cast %168 : vector<64xf32> to vector<64x1xf32>
    %170 = vector.extract_strided_slice %166 {offsets = [0, 0], sizes = [32, 1], strides = [1, 1]} : vector<64x1xf32> to vector<32x1xf32>
    %171 = vector.extract_strided_slice %169 {offsets = [0, 0], sizes = [32, 1], strides = [1, 1]} : vector<64x1xf32> to vector<32x1xf32>
    %172 = vector.extract_strided_slice %166 {offsets = [32, 0], sizes = [32, 1], strides = [1, 1]} : vector<64x1xf32> to vector<32x1xf32>
    %173 = arith.addf %170, %172 : vector<32x1xf32>
    %174 = vector.extract_strided_slice %169 {offsets = [32, 0], sizes = [32, 1], strides = [1, 1]} : vector<64x1xf32> to vector<32x1xf32>
    %175 = arith.addf %171, %174 : vector<32x1xf32>
    %cst_74 = arith.constant 0.001953125 : f32
    %176 = vector.broadcast %cst_74 : f32 to vector<32x1xf32>
    %177 = arith.mulf %173, %176 : vector<32x1xf32>
    %cst_75 = arith.constant 0.001953125 : f32
    %178 = vector.broadcast %cst_75 : f32 to vector<32x1xf32>
    %179 = arith.mulf %175, %178 : vector<32x1xf32>
    %180 = arith.mulf %177, %177 : vector<32x1xf32>
    %181 = arith.subf %179, %180 : vector<32x1xf32>
    %cst_76 = arith.constant 0.000000e+00 : f32
    %182 = vector.broadcast %cst_76 : f32 to vector<32x1xf32>
    %183 = arith.maximumf %181, %182 : vector<32x1xf32>
    %cst_77 = arith.constant 9.99999974E-6 : f32
    %184 = vector.broadcast %cst_77 : f32 to vector<32x1xf32>
    %185 = arith.addf %183, %184 : vector<32x1xf32>
    %186 = math.rsqrt %185 : vector<32x1xf32>
    %c0_78 = arith.constant 0 : index
    %c0_79 = arith.constant 0 : index
    %187 = vector.load %arg8[%c0_78, %c0_79] : memref<32x1xf32, #tpu.memory_space<vmem>>, vector<32x1xf32>
    %188 = arith.mulf %186, %187 : vector<32x1xf32>
    %c0_80 = arith.constant 0 : index
    %c0_81 = arith.constant 0 : index
    %189 = vector.load %arg9[%c0_80, %c0_81] : memref<32x1xf32, #tpu.memory_space<vmem>>, vector<32x1xf32>
    %190 = arith.mulf %177, %188 : vector<32x1xf32>
    %191 = arith.subf %189, %190 : vector<32x1xf32>
    %192 = tpu.concatenate %188, %188 in 0 : vector<32x1xf32>, vector<32x1xf32> -> vector<64x1xf32>
    %193 = tpu.concatenate %191, %191 in 0 : vector<32x1xf32>, vector<32x1xf32> -> vector<64x1xf32>
    %194 = vector.broadcast %192 : vector<64x1xf32> to vector<64x256xf32>
    %195 = arith.mulf %164, %194 : vector<64x256xf32>
    %196 = vector.broadcast %193 : vector<64x1xf32> to vector<64x256xf32>
    %197 = arith.addf %195, %196 : vector<64x256xf32>
    %cst_82 = arith.constant 0.000000e+00 : f32
    %198 = vector.broadcast %cst_82 : f32 to vector<64x256xf32>
    %199 = arith.maximumf %197, %198 : vector<64x256xf32>
    %c0_83 = arith.constant 0 : index
    %c0_84 = arith.constant 0 : index
    %200 = vector.load %arg10[%c0_83, %c0_84] : memref<64x256xf32, #tpu.memory_space<vmem>>, vector<64x256xf32>
    tpu.vector_store %arg10[%c0_83, %c0_84], %199 {strides = array<i32>} : memref<64x256xf32, #tpu.memory_space<vmem>>, vector<64x256xf32>,
    return
  }
}

</mosaic_0001>

<bundles_post_ra>
// kernel: message_embedding_forward.1
= control target key start
LH: loop header
LB: loop body
LE: loop exit
PB: predicated region body
PF: predicated region fallthrough
CT: control target
= control target key end

     0   :  { %vm114_vm0 = vcmask 130048   ;;  %v3342_v1 = vmov 0   ;;  %vm245_vm1 = vcmask 523264   ;;  %s3345_s21 = smov 17   ;;  %s3347_s22 = smov 1   ;;  %vm587_vm7 = vcmask 261120   ;;  %s4614_s1 = inlined_call_operand.vmem [shape: f32[2,16], index: 1, kind: input, shape index: {}]   ;;  %s4615_s2 = inlined_call_operand.vmem [shape: bf16[64,16], index: 2, kind: input, shape index: {}]   ;;  %s4616_s5 = inlined_call_operand.vmem [shape: f32[64,1], index: 5, kind: input, shape index: {}]   ;;  %s4617_s6 = inlined_call_operand.vmem [shape: f32[32,1], index: 6, kind: input, shape index: {}]   ;;  %s4618_s3 = inlined_call_operand.vmem [shape: bf16[32,64], index: 3, kind: input, shape index: {}]   ;;  %s4619_s0 = inlined_call_operand.vmem [shape: f32[64,256], index: 0, kind: input, shape index: {}]   ;;  %s4620_s4 = inlined_call_operand.vmem [shape: bf16[9,32,32], index: 4, kind: input, shape index: {}]   ;;  %s4621_s7 = inlined_call_operand.vmem [shape: f32[32,1], index: 7, kind: input, shape index: {}]   ;;  %s4622_s8 = inlined_call_operand.vmem [shape: f32[32,1], index: 8, kind: input, shape index: {}]   ;;  %s4623_s9 = inlined_call_operand.vmem [shape: f32[32,1], index: 9, kind: input, shape index: {}]   ;;  %s4624_s10 = inlined_call_operand.vmem [shape: f32[64,256], index: 10, kind: output, shape index: {}]  }
   0x1   :  { %v44_v0 = vld [vmem:[%s4614_s1] sm:$0x3]  ;;  %2980 = vset.pattern.permute.xlu0 %v3342_v1  ;;  %2981 = vset.pattern.permute.xlu1 %v3342_v1  ;;  %v48_v6 = vld [vmem:[%s4616_s5 + $0x10] sm:$0xff]  ;;  %v47_v7 = vld [vmem:[%s4616_s5 + $0x8] sm:$0xff]  ;;  %s3348_s23 = smov 113   ;;  %s3349_s24 = smov 112  }
   0x2   :  { %v45_v2 = vpack.c.bf16 %v44_v0, %v44_v0  ;;  %v3302_v3 = vld [vmem:[%s4615_s2] sm:$0xff]   ;;  %66 = vperm.xlu1 %2981, %v48_v6   ;;  %v49_v8 = vld [vmem:[%s4616_s5 + $0x18] sm:$0xff]  ;;  %v3303_v9 = vld [vmem:[%s4615_s2 + $0x8] sm:$0xff]  }
   0x3   :  { %2822 = vmatprep.mubr.msk.bf16.mxu0 %vm114_vm0, %v3302_v3  ;;  %v46_v5 = vld [vmem:[%s4616_s5] sm:$0xff]  ;;  %v3304_v10 = vld [vmem:[%s4615_s2 + $0x10] sm:$0xff]   ;;  %v51_v12 = vld [vmem:[%s4616_s5 + $0x28] sm:$0xff] }
   0x4   :  { %2970 = vmatprep.subr.msk.bf16.mxu0 %vm114_vm0, %v45_v2  ;;  %v128_v4 = vsel %vm114_vm0, %v45_v2, 0  ;;  %56 = vperm.xlu0 %2980, %v46_v5   ;;  %v50_v11 = vld [vmem:[%s4616_s5 + $0x20] sm:$0xff]  ;;  %v52_v13 = vld [vmem:[%s4616_s5 + $0x30] sm:$0xff]  ;;  %v53_v14 = vld [vmem:[%s4616_s5 + $0x38] sm:$0xff]  ;;  %s3344_s5 = smov 16  }
   0x5   :  { %2821 = vmatpush3.bf16.xpose.msra.mxu0 %v128_v4  ;;  %v3305_v15 = vld [vmem:[%s4615_s2 + $0x18] sm:$0xff]   ;;  %v211_v16 = vld [vmem:[%s4617_s6] sm:$0xff]  ;;  %v212_v17 = vld [vmem:[%s4617_s6 + $0x8] sm:$0xff]  ;;  %s3346_s2 = smov 15  }
   0x6   :  { %71 = vperm.xlu1 %2981, %v49_v8   ;;  %v213_v18 = vld [vmem:[%s4617_s6 + $0x10] sm:$0xff]  ;;  %v214_v19 = vld [vmem:[%s4617_s6 + $0x18] sm:$0xff]  ;;  %v3306_v20 = vld [vmem:[%s4618_s3] sm:$0xff]  }
   0x7   :  { %2838 = vmatprep.mubr.msk.bf16.mxu1 %vm245_vm1, %v3306_v20  ;;  %v3307_v57 = vld [vmem:[%s4618_s3 + $0x8] sm:$0xff]   ;;  %s3343_s3 = smov 127  }
   0x8   :  { %61 = vperm.xlu0 %2980, %v47_v7  }
   0xa   :  { %81 = vperm.xlu1 %2981, %v51_v12  }
   0xc   :  { %2823 = vmatmul.mubr.msk.bf16.vlgmr.msra.gmra.mrb[0].mxu0 %vm114_vm0, %v3303_v9  ;;  %76 = vperm.xlu0 %2980, %v50_v11  }
   0xd   :  { %2826 = vmatprep.mubr.msk.bf16.mxu0 %vm114_vm0, %v3304_v10 }
   0xe   :  { %91 = vperm.xlu1 %2981, %v53_v14  }
  0x10   :  { %86 = vperm.xlu0 %2980, %v52_v13  }
  0x12   :  { %222 = vperm.xlu1 %2981, %v212_v17  }
  0x14   :  { %2827 = vmatmul.mubr.msk.bf16.gmra.mrb[4].mxu0 %vm114_vm0, %v3305_v15  ;;  %217 = vperm.xlu0 %2980, %v211_v16  }
  0x15   :  { %626 = vmatprep.mubr.bf16.mxu0 %v3342_v1 }
  0x16   :  { %232 = vperm.xlu1 %2981, %v214_v19  }
  0x18   :  { %227 = vperm.xlu0 %2980, %v213_v18  }
  0x81   :  { %v67_v22 = vpop.permute.xlu1 %66 }
  0x83   :  { %v57_v21 = vpop.permute.xlu0 %56 }
  0x85   :  { %v72_v24 = vpop.permute.xlu1 %71 }
  0x87   :  { %v62_v23 = vpop.permute.xlu0 %61 }
  0x89   :  { %v82_v33 = vpop.permute.xlu1 %81 }
  0x8b   :  { %v77_v28 = vpop.permute.xlu0 %76 }
  0x8d   :  { %v92_v45 = vpop.permute.xlu1 %91 }
  0x8f   :  { %v87_v40 = vpop.permute.xlu0 %86 }
  0x91   :  { %v223_v59 = vpop.permute.xlu1 %222 }
  0x93   :  { %v218_v58 = vpop.permute.xlu0 %217 }
  0x95   :  { %v233_v3 = vpop.permute.xlu1 %232 }
  0x97   :  { %v228_v60 = vpop.permute.xlu0 %227 }
  0xdf   :  { %v2824_v25 = vpop.f32.mrb[0].mxu0 }
  0xe0   :  { %v173_v26 = vadd.f32 %v2824_v25, %v67_v22  ;;  %v164_v27 = vpop.f32.mrb[1].mxu0  ;;  %v325_v22 = vld [vmem:[%s4619_s0 + $0x20] sm:$0xff] }
  0xe1   :  { %v165_v29 = vadd.f32 %v164_v27, %v57_v21  ;;  %v2825_v30 = vpop.f32.mrb[2].mxu0  ;;  %v327_v21 = vld [vmem:[%s4619_s0 + $0x30] sm:$0xff] }
  0xe2   :  { %v176_v31 = vadd.f32 %v2825_v30, %v72_v24  ;;  %v167_v32 = vpop.f32.mrb[3].mxu0  ;;  %v197_v35 = vmax.f32 %v173_v26, 0.0  ;;  %v323_v24 = vld [vmem:[%s4619_s0 + $0x10] sm:$0xff]  ;;  %v326_v26 = vld [vmem:[%s4619_s0 + $0x28] sm:$0xff] }
  0xe3   :  { %v168_v34 = vadd.f32 %v167_v32, %v62_v23  ;;  %v195_v37 = vmax.f32 %v165_v29, 0.0  ;;  %v321_v29 = vld [vmem:[%s4619_s0] sm:$0xff]  ;;  %v328_v32 = vld [vmem:[%s4619_s0 + $0x38] sm:$0xff] }
  0xe4   :  { %v198_v36 = vmax.f32 %v176_v31, 0.0  ;;  %v322_v31 = vld [vmem:[%s4619_s0 + $0x8] sm:$0xff] }
  0xe5   :  { %v196_v38 = vmax.f32 %v168_v34, 0.0 }
  0xe6   :  { %v208_v39 = vpack.c.bf16 %v198_v36, %v197_v35 }
  0xe7   :  { %v2828_v41 = vpop.f32.mrb[4].mxu0  ;;  %v207_v42 = vpack.c.bf16 %v196_v38, %v195_v37 }
  0xe8   :  { %v189_v43 = vadd.f32 %v2828_v41, %v87_v40  ;;  %v180_v44 = vpop.f32.mrb[5].mxu0 }
  0xe9   :  { %v181_v46 = vadd.f32 %v180_v44, %v77_v28  ;;  %v2829_v47 = vpop.f32.mrb[6].mxu0  ;;  %2830 = vmatprep.subr.bf16.mxu1 %v207_v42  ;;  %v324_v28 = vld [vmem:[%s4619_s0 + $0x18] sm:$0xff] }
  0xea   :  { %v192_v48 = vadd.f32 %v2829_v47, %v92_v45  ;;  %v183_v49 = vpop.f32.mrb[7].mxu0  ;;  %2831 = vmatpush3.bf16.msra.mxu1 %v207_v42  ;;  %v201_v51 = vmax.f32 %v189_v43, 0.0 }
  0xeb   :  { %v184_v50 = vadd.f32 %v183_v49, %v82_v33  ;;  %2832 = vmatprep.subr.bf16.mxu1 %v208_v39  ;;  %v199_v53 = vmax.f32 %v181_v46, 0.0  ;;  %v332_v49 = vld [vmem:[%s4619_s0 + $0x58] sm:$0xff] }
  0xec   :  { %v202_v52 = vmax.f32 %v192_v48, 0.0  ;;  %v331_v48 = vld [vmem:[%s4619_s0 + $0x50] sm:$0xff] }
  0xed   :  { %v200_v54 = vmax.f32 %v184_v50, 0.0 }
  0xee   :  { %v210_v55 = vpack.c.bf16 %v202_v52, %v201_v51  ;;  %2833 = vmatpush3.bf16.msra.mxu1 %v208_v39  ;;  %v329_v51 = vld [vmem:[%s4619_s0 + $0x40] sm:$0xff]  ;;  %v330_v52 = vld [vmem:[%s4619_s0 + $0x48] sm:$0xff] }
  0xef   :  { %v209_v56 = vpack.c.bf16 %v200_v54, %v199_v53 }
  0xf1   :  { %2834 = vmatprep.subr.bf16.mxu1 %v209_v56 }
  0xf2   :  { %2835 = vmatpush3.bf16.msra.mxu1 %v209_v56  ;;  %v333_v56 = vld [vmem:[%s4619_s0 + $0x60] sm:$0xff] }
  0xf3   :  { %2836 = vmatprep.subr.bf16.mxu1 %v210_v55 }
  0xf6   :  { %2837 = vmatpush3.bf16.msra.mxu1 %v210_v55 }
  0xf9   :  { %2839 = vmatmul.mubr.msk.bf16.vlgmr.msra.gmra.mrb[0].mxu1 %vm245_vm1, %v3307_v57  ;;  %v335_v57 = vld [vmem:[%s4619_s0 + $0x70] sm:$0xff] }
  0xfa   :  { %748 = vmatprep.mubr.bf16.mxu1 %v3342_v1 }
 0x1cc   :  { %v2840_v61 = vpop.f32.mrb[0].mxu1 }
 0x1cd   :  { %v295_v62 = vadd.f32 %v2840_v61, %v228_v60  ;;  %v286_v63 = vpop.f32.mrb[1].mxu1  ;;  %v334_v61 = vld [vmem:[%s4619_s0 + $0x68] sm:$0xff] }
 0x1ce   :  { %v287_v0 = vadd.f32 %v286_v63, %v218_v58  ;;  %v2841_v2 = vpop.f32.mrb[2].mxu1  ;;  %v336_v58 = vld [vmem:[%s4619_s0 + $0x78] sm:$0xff]  ;;  %s3350_s0 = smov 111  }
 0x1cf   :  { %v289_v4 = vpop.f32.mrb[3].mxu1  ;;  %v298_v5 = vadd.f32 %v2841_v2, %v233_v3 }
 0x1d0   :  { %3326 = vtanh.f32 %v287_v0  ;;  %v290_v6 = vadd.f32 %v289_v4, %v223_v59 }
 0x1d1   :  { %3328 = vtanh.f32 %v295_v62 }
 0x1d2   :  { %3330 = vtanh.f32 %v290_v6 }
 0x1d3   :  { %3332 = vtanh.f32 %v298_v5 }
 0x1da   :  { %v3327_v7 = vpop.eup %3326 }
 0x1db   :  { %v3329_v8 = vpop.eup %3328  ;;  %v305_v9 = vmul.f32 0.1, %v3327_v7 }
 0x1dc   :  { %v3331_v10 = vpop.eup %3330  ;;  %v307_v13 = vmul.f32 0.1, %v3329_v8 }
 0x1dd   :  { %v306_v11 = vmul.f32 0.1, %v3331_v10  ;;  %313 = vrot.lane.b32.xlu0 %v305_v9, %s3343_s3  ;;  %v3333_v12 = vpop.eup %3332 }
 0x1de   :  { %v308_v14 = vmul.f32 0.1, %v3333_v12 }
 0x1df   :  { %315 = vrot.lane.b32.xlu1 %v306_v11, %s3343_s3 }
 0x1e1   :  { %317 = vrot.lane.b32.xlu0 %v307_v13, %s3343_s3 }
 0x1e3   :  { %319 = vrot.lane.b32.xlu1 %v308_v14, %s3343_s3 }
 0x1e5   :  { %338 = vperm.xlu0 %2980, %v305_v9  }
 0x1e7   :  { %350 = vperm.xlu1 %2981, %v308_v14  }
 0x1e9   :  { %346 = vperm.xlu0 %2980, %v307_v13   ;;  %v385_v13 = vlaneseq }
 0x1eb   :  { %342 = vperm.xlu1 %2981, %v306_v11  }
 0x24f   :  { %v314_v15 = vpop.permute.xlu0 %313 }
 0x250   :  { %354 = vperm.xlu0 %2980, %v314_v15   ;;  %v3673_v15 = vand.u32 127, %v385_v13  ;;  %v4020_v13 = vld [vmem:[%s4620_s4 + $0x48] sm:$0xff]  }
 0x251   :  { %v316_v16 = vpop.permute.xlu1 %315 }
 0x252   :  { %358 = vperm.xlu1 %2981, %v316_v16   ;;  %vm531_vm2 = vcmp.lt.s32.totalorder %v3673_v15, 16  ;;  %vm416_vm3 = vcmp.ge.s32.totalorder %v3673_v15, 16  ;;  %vm452_vm6 = vcmp.lt.s32.totalorder %v3673_v15, 17  ;;  %vm4626_vm13 = vcmp.lt.s32.totalorder %v3673_v15, 15 }
 0x253   :  { %v318_v17 = vpop.permute.xlu0 %317  ;;  %vm3699_vm4 = vmpackc.low %vm416_vm3, %vm416_vm3 }
 0x254   :  { %362 = vperm.xlu0 %2980, %v318_v17  }
 0x255   :  { %v320_v18 = vpop.permute.xlu1 %319 }
 0x256   :  { %366 = vperm.xlu1 %2981, %v320_v18  }
 0x264   :  { %v339_v19 = vpop.permute.xlu0 %338 }
 0x265   :  { %v3517_v37 = vadd.f32 %v339_v19, %v321_v29  ;;  %v3521_v38 = vadd.f32 %v339_v19, %v322_v31 }
 0x266   :  { %v351_v20 = vpop.permute.xlu1 %350 }
 0x267   :  { %v3488_v25 = vadd.f32 %v351_v20, %v327_v21  ;;  %v3523_v39 = vadd.f32 %v351_v20, %v328_v32  ;;  %v3704_v32 = vadd.s32 128, %v3673_v15 }
 0x268   :  { %v347_v23 = vpop.permute.xlu0 %346 }
 0x269   :  { %v3493_v27 = vadd.f32 %v347_v23, %v325_v22  ;;  %v3513_v35 = vadd.f32 %v347_v23, %v326_v26  ;;  %v2275_v23 = vld [vmem:[%s4621_s7] sm:$0xff] }
 0x26a   :  { %v343_v30 = vpop.permute.xlu1 %342 }
 0x26b   :  { %v3507_v33 = vadd.f32 %v343_v30, %v323_v24  ;;  %v3511_v34 = vpack.i.bf16 %v3488_v25, %v3493_v27  ;;  %v3515_v36 = vadd.f32 %v343_v30, %v324_v28  ;;  %v3531_v41 = vpack.i.bf16 %v3523_v39, %v3513_v35 }
 0x26c   :  { %v1259_v45 = vpack.c.bf16 %v3523_v39, %v3513_v35  ;;  %v1258_v46 = vpack.c.bf16 %v3488_v25, %v3493_v27 }
 0x26d   :  { %2983 = vrot.lane.b32.xlu0 %v3511_v34, %s3344_s5  ;;  %v3527_v40 = vpack.i.bf16 %v3507_v33, %v3517_v37  ;;  %v3535_v42 = vpack.i.bf16 %v3515_v36, %v3521_v38  ;;  %v1257_v43 = vpack.c.bf16 %v3515_v36, %v3521_v38  ;;  %v1256_v44 = vpack.c.bf16 %v3507_v33, %v3517_v37 }
 0x271   :  { %2988 = vrot.lane.b32.xlu0 %v3527_v40, %s3344_s5 }
 0x275   :  { %2993 = vrot.lane.b32.xlu0 %v3535_v42, %s3344_s5 }
 0x279   :  { %2998 = vrot.lane.b32.xlu0 %v3531_v41, %s3344_s5 }
 0x27d   :  { %3023 = vrot.lane.b32.xlu0 %v3527_v40, %s3345_s21 }
 0x281   :  { %3028 = vrot.lane.b32.xlu0 %v3535_v42, %s3345_s21 }
 0x285   :  { %3033 = vrot.lane.b32.xlu0 %v3511_v34, %s3345_s21 }
 0x289   :  { %3043 = vrot.lane.b32.xlu0 %v3531_v41, %s3345_s21 }
 0x28d   :  { %3063 = vrot.lane.b32.xlu0 %v3527_v40, %s3346_s2 }
 0x291   :  { %3068 = vrot.lane.b32.xlu0 %v3535_v42, %s3346_s2 }
 0x295   :  { %3073 = vrot.lane.b32.xlu0 %v3511_v34, %s3346_s2 }
 0x299   :  { %3083 = vrot.lane.b32.xlu0 %v3531_v41, %s3346_s2 }
 0x29d   :  { %3103 = vrot.lane.b32.xlu0 %v3527_v40, %s3347_s22 }
 0x2a1   :  { %3108 = vrot.lane.b32.xlu0 %v3535_v42, %s3347_s22 }
 0x2a5   :  { %3113 = vrot.lane.b32.xlu0 %v3511_v34, %s3347_s22 }
 0x2a9   :  { %3123 = vrot.lane.b32.xlu0 %v3531_v41, %s3347_s22 }
 0x2ad   :  { %3143 = vrot.lane.b32.xlu0 %v3527_v40, %s3343_s3 }
 0x2b1   :  { %3148 = vrot.lane.b32.xlu0 %v3535_v42, %s3343_s3 }
 0x2b5   :  { %3153 = vrot.lane.b32.xlu0 %v3511_v34, %s3343_s3 }
 0x2b9   :  { %3163 = vrot.lane.b32.xlu0 %v3531_v41, %s3343_s3 }
 0x2bd   :  { %3183 = vrot.lane.b32.xlu0 %v3527_v40, %s3348_s23 }
 0x2c1   :  { %3188 = vrot.lane.b32.xlu0 %v3535_v42, %s3348_s23 }
 0x2c5   :  { %3193 = vrot.lane.b32.xlu0 %v3511_v34, %s3348_s23 }
 0x2c9   :  { %3203 = vrot.lane.b32.xlu0 %v3531_v41, %s3348_s23 }
 0x2cd   :  { %3223 = vrot.lane.b32.xlu0 %v3527_v40, %s3349_s24 }
 0x2cf   :  { %v355_v47 = vpop.permute.xlu0 %354 }
 0x2d0   :  { %v3620_v59 = vadd.f32 %v355_v47, %v329_v51  ;;  %v3622_v60 = vadd.f32 %v355_v47, %v330_v52  ;;  %v392_v47 = vand.u32 15, %v3673_v15 }
 0x2d1   :  { %v359_v50 = vpop.permute.xlu1 %358  ;;  %3228 = vrot.lane.b32.xlu0 %v3535_v42, %s3349_s24 }
 0x2d2   :  { %v3607_v53 = vadd.f32 %v359_v50, %v331_v48  ;;  %v3609_v54 = vadd.f32 %v359_v50, %v332_v49  ;;  %v2277_v50 = vld [vmem:[%s4621_s7 + $0x10] sm:$0xff]  ;;  %vm3723_vm5 = vcmp.gt.s32.totalorder %v392_v47, 0  ;;  %vm3795_vm12 = vcmp.lt.s32.totalorder %v392_v47, 15 }
 0x2d3   :  { %v363_v55 = vpop.permute.xlu0 %362  ;;  %vm469_vm9 = vmand %vm416_vm3, %vm3723_vm5 }
 0x2d4   :  { %v3629_v63 = vadd.f32 %v363_v55, %v333_v56  ;;  %v3637_v3 = vpack.i.bf16 %v3607_v53, %v3620_v59  ;;  %v3641_v4 = vpack.i.bf16 %v3609_v54, %v3622_v60  ;;  %v3643_v5 = vadd.f32 %v363_v55, %v334_v61  ;;  %vm3764_vm11 = vmpackc.low %vm469_vm9, %vm469_vm9  ;;  %v3904_v61 = vld [vmem:[%s4620_s4 + $0x28] sm:$0xff]  }
 0x2d5   :  { %v367_v62 = vpop.permute.xlu1 %366  ;;  %3233 = vrot.lane.b32.xlu0 %v3511_v34, %s3349_s24  ;;  %v1261_v8 = vpack.c.bf16 %v3609_v54, %v3622_v60  ;;  %v1260_v9 = vpack.c.bf16 %v3607_v53, %v3620_v59  ;;  %vm871_vm15 = vmand %vm416_vm3, %vm3795_vm12  ;;  %vm4625_vm3 = vcmp.lt.s32.totalorder %v3673_v15, 1 }
 0x2d6   :  { %v3631_v0 = vadd.f32 %v367_v62, %v335_v57  ;;  %v3633_v2 = vadd.f32 %v367_v62, %v336_v58  ;;  %v399_v57 = vand.u32 15, %v3704_v32  ;;  %v3732_v62 = vld [vmem:[%s4620_s4 + $0x10] sm:$0xff]   ;;  %vm3836_vm1 = vmpackc.low %vm871_vm15, %vm871_vm15  ;;  %vm4628_vm15 = vcmp.lt.s32.totalorder %v3673_v15, 113 }
 0x2d7   :  { %vm3890_vm9 = vmpackc.low %vm3723_vm5, %vm3723_vm5  ;;  %vm4627_vm5 = vcmp.lt.s32.totalorder %v3673_v15, 127 }
 0x2d8   :  { %v3647_v6 = vpack.i.bf16 %v3631_v0, %v3629_v63  ;;  %v3655_v7 = vpack.i.bf16 %v3633_v2, %v3643_v5  ;;  %v1263_v10 = vpack.c.bf16 %v3633_v2, %v3643_v5  ;;  %vm3737_vm8 = vcmp.gt.s32.totalorder %v399_v57, 0 }
 0x2d9   :  { %3243 = vrot.lane.b32.xlu0 %v3531_v41, %s3349_s24  ;;  %vm3758_vm10 = vmpackc.low %vm3737_vm8, %vm3737_vm8  ;;  %vm3809_vm14 = vcmp.lt.s32.totalorder %v399_v57, 15  ;;  %v4675_v53 = vpack.c.bf16 %v3631_v0, %v3629_v63 }
 0x2da   :  { %3003 = vrot.lane.b32.xlu1 %v3647_v6, %s3344_s5  ;;  %vm3830_vm0 = vmpackc.low %vm3809_vm14, %vm3809_vm14 }
 0x2dd   :  { %3263 = vrot.lane.b32.xlu0 %v3527_v40, %s3350_s0 }
 0x2de   :  { %3008 = vrot.lane.b32.xlu1 %v3637_v3, %s3344_s5 }
 0x2df   :  { %v2984_v12 = vpop.permute.xlu0 %2983 }
 0x2e0   :  { %v2985_v40 = vunpack.i.l.bf16 %v2984_v12 }
 0x2e1   :  { %3268 = vrot.lane.b32.xlu0 %v3535_v42, %s3350_s0 }
 0x2e2   :  { %3013 = vrot.lane.b32.xlu1 %v3641_v4, %s3344_s5 }
 0x2e3   :  { %v2989_v14 = vpop.permute.xlu0 %2988 }
 0x2e4   :  { %v2991_v17 = vunpack.i.h.bf16 %v2989_v14  ;;  %v2990_v18 = vunpack.i.l.bf16 %v2989_v14 }
 0x2e5   :  { %3273 = vrot.lane.b32.xlu0 %v3511_v34, %s3350_s0  ;;  %v2986_v34 = vunpack.i.h.bf16 %v2984_v12 }
 0x2e6   :  { %3018 = vrot.lane.b32.xlu1 %v3655_v7, %s3344_s5 }
 0x2e7   :  { %v2994_v16 = vpop.permute.xlu0 %2993 }
 0x2e8   :  { %v2996_v19 = vunpack.i.h.bf16 %v2994_v16  ;;  %v2995_v20 = vunpack.i.l.bf16 %v2994_v16 }
 0x2e9   :  { %3283 = vrot.lane.b32.xlu0 %v3531_v41, %s3350_s0 }
 0x2ea   :  { %v540_v21 = vsel %vm531_vm2, %v2995_v20, %v2990_v18  ;;  %v541_v22 = vsel %vm531_vm2, %v2996_v19, %v2991_v17  ;;  %3038 = vrot.lane.b32.xlu1 %v3647_v6, %s3345_s21  ;;  %v532_v24 = vsel %vm531_vm2, %v2990_v18, %v2995_v20  ;;  %v533_v26 = vsel %vm531_vm2, %v2991_v17, %v2996_v19 }
 0x2eb   :  { %v2562_v28 = vpack.c.bf16 %v541_v22, %v540_v21  ;;  %v2999_v29 = vpop.permute.xlu0 %2998  ;;  %v565_v30 = vpack.c.bf16 %v533_v26, %v532_v24 }
 0x2ec   :  { %v3001_v41 = vunpack.i.h.bf16 %v2999_v29  ;;  %v3000_v42 = vunpack.i.l.bf16 %v2999_v29 }
 0x2ed   :  { %2281 = vperm.xlu0 %2980, %v2275_v23   ;;  %594 = vmatprep.subr.bf16.mxu0 %v565_v30  ;;  %v3776_v30 = vld [vmem:[%s4620_s4 + $0x18] sm:$0xff]  }
 0x2ee   :  { %v543_v48 = vsel %vm531_vm2, %v3001_v41, %v2986_v34  ;;  %v542_v49 = vsel %vm531_vm2, %v3000_v42, %v2985_v40  ;;  %3048 = vrot.lane.b32.xlu1 %v3637_v3, %s3345_s21  ;;  %2563 = vmatpush1.bf16.msk.msra.mxu0 %vm3699_vm4, %v2562_v28  ;;  %v534_v51 = vsel %vm531_vm2, %v2985_v40, %v3000_v42 }
 0x2ef   :  { %v2565_v52 = vpack.c.bf16 %v543_v48, %v542_v49  ;;  %v3024_v55 = vpop.permute.xlu0 %3023  ;;  %v535_v56 = vsel %vm531_vm2, %v2986_v34, %v3001_v41 }
 0x2f0   :  { %v567_v58 = vpack.c.bf16 %v535_v56, %v534_v51  ;;  %v3026_v14 = vunpack.i.h.bf16 %v3024_v55  ;;  %v3025_v16 = vunpack.i.l.bf16 %v3024_v55 }
 0x2f1   :  { %2291 = vperm.xlu0 %2980, %v2277_v50  }
 0x2f2   :  { %596 = vmatprep.subr.bf16.mxu0 %v567_v58  ;;  %3053 = vrot.lane.b32.xlu1 %v3641_v4, %s3345_s21 }
 0x2f3   :  { %2566 = vmatpush1.bf16.msk.msra.mxu0 %vm3699_vm4, %v2565_v52  ;;  %v3029_v12 = vpop.permute.xlu0 %3028 }
 0x2f4   :  { %v3031_v17 = vunpack.i.h.bf16 %v3029_v12  ;;  %v3030_v18 = vunpack.i.l.bf16 %v3029_v12 }
 0x2f6   :  { %v453_v19 = vsel %vm452_vm6, %v3025_v16, %v3030_v18  ;;  %v454_v20 = vsel %vm452_vm6, %v3026_v14, %v3031_v17  ;;  %v461_v21 = vsel %vm452_vm6, %v3030_v18, %v3025_v16  ;;  %v462_v22 = vsel %vm452_vm6, %v3031_v17, %v3026_v14  ;;  %2567 = vmatmul.mubr.msk.bf16.vlgmr.msra.gmra.mrb[8].mxu0 %vm587_vm7, %v3732_v62  ;;  %v3804_v14 = vld [vmem:[%s4620_s4] sm:$0xff]  }
 0x2f7   :  { %v2572_v24 = vpack.c.bf16 %v454_v20, %v453_v19  ;;  %v2575_v26 = vpack.c.bf16 %v462_v22, %v461_v21  ;;  %3058 = vrot.lane.b32.xlu1 %v3655_v7, %s3345_s21  ;;  %v3034_v28 = vpop.permute.xlu0 %3033  ;;  %636 = vmatprep.mubr.bf16.mxu0 %v3342_v1 }
 0x2f8   :  { %v3036_v40 = vunpack.i.h.bf16 %v3034_v28  ;;  %v3035_v41 = vunpack.i.l.bf16 %v3034_v28 }
 0x2f9   :  { %2573 = vmatprep.subr.msk.bf16.mxu0 %vm3758_vm10, %v2572_v24 }
 0x2fa   :  { %2576 = vmatpush1.bf16.msk.msra.mxu0 %vm3764_vm11, %v2575_v26 }
 0x2fb   :  { %3078 = vrot.lane.b32.xlu1 %v3647_v6, %s3346_s2  ;;  %v3044_v34 = vpop.permute.xlu0 %3043 }
 0x2fc   :  { %v3046_v42 = vunpack.i.h.bf16 %v3044_v34  ;;  %v3045_v48 = vunpack.i.l.bf16 %v3044_v34 }
 0x2fe   :  { %v455_v49 = vsel %vm452_vm6, %v3035_v41, %v3045_v48  ;;  %v456_v50 = vsel %vm452_vm6, %v3036_v40, %v3046_v42  ;;  %v463_v51 = vsel %vm452_vm6, %v3045_v48, %v3035_v41  ;;  %v464_v52 = vsel %vm452_vm6, %v3046_v42, %v3036_v40  ;;  %2568 = vmatmul.mubr.msk.bf16.gmra.mrb[12].mxu0 %vm587_vm7, %v3776_v30  ;;  %v3848_v42 = vld [vmem:[%s4620_s4 + $0x8] sm:$0xff]  }
 0x2ff   :  { %v2578_v55 = vpack.c.bf16 %v456_v50, %v455_v49  ;;  %v2581_v56 = vpack.c.bf16 %v464_v52, %v463_v51  ;;  %3088 = vrot.lane.b32.xlu1 %v3637_v3, %s3346_s2  ;;  %v3064_v58 = vpop.permute.xlu0 %3063  ;;  %695 = vmatprep.mubr.bf16.mxu0 %v3342_v1 }
 0x300   :  { %v3066_v47 = vunpack.i.h.bf16 %v3064_v58  ;;  %v3065_v18 = vunpack.i.l.bf16 %v3064_v58 }
 0x301   :  { %2579 = vmatprep.subr.msk.bf16.mxu0 %vm3758_vm10, %v2578_v55 }
 0x302   :  { %2582 = vmatpush1.bf16.msk.msra.mxu0 %vm3764_vm11, %v2581_v56 }
 0x303   :  { %3093 = vrot.lane.b32.xlu1 %v3641_v4, %s3346_s2  ;;  %v3069_v16 = vpop.permute.xlu0 %3068 }
 0x304   :  { %v3071_v19 = vunpack.i.h.bf16 %v3069_v16  ;;  %v3070_v20 = vunpack.i.l.bf16 %v3069_v16 }
 0x306   :  { %v855_v21 = vsel %vm4626_vm13, %v3065_v18, %v3070_v20  ;;  %v856_v22 = vsel %vm4626_vm13, %v3066_v47, %v3071_v19  ;;  %v863_v57 = vsel %vm4626_vm13, %v3070_v20, %v3065_v18  ;;  %v864_v24 = vsel %vm4626_vm13, %v3071_v19, %v3066_v47  ;;  %2583 = vmatmul.mubr.msk.bf16.vlgmr.msra.gmra.mrb[8].mxu0 %vm587_vm7, %v3804_v14  ;;  %v3872_v20 = vld [vmem:[%s4620_s4 + $0x20] sm:$0xff]  }
 0x307   :  { %v2614_v28 = vpack.c.bf16 %v856_v22, %v855_v21  ;;  %v2617_v34 = vpack.c.bf16 %v864_v24, %v863_v57  ;;  %3098 = vrot.lane.b32.xlu1 %v3655_v7, %s3346_s2  ;;  %v3074_v40 = vpop.permute.xlu0 %3073  ;;  %705 = vmatprep.mubr.bf16.mxu0 %v3342_v1 }
 0x308   :  { %v3076_v49 = vunpack.i.h.bf16 %v3074_v40  ;;  %v3075_v50 = vunpack.i.l.bf16 %v3074_v40 }
 0x309   :  { %2615 = vmatprep.subr.msk.bf16.mxu0 %vm3830_vm0, %v2614_v28 }
 0x30a   :  { %2618 = vmatpush1.bf16.msk.msra.mxu0 %vm3836_vm1, %v2617_v34 }
 0x30b   :  { %3118 = vrot.lane.b32.xlu1 %v3647_v6, %s3347_s22  ;;  %v3084_v48 = vpop.permute.xlu0 %3083 }
 0x30c   :  { %v3086_v51 = vunpack.i.h.bf16 %v3084_v48  ;;  %v3085_v52 = vunpack.i.l.bf16 %v3084_v48 }
 0x30e   :  { %v857_v55 = vsel %vm4626_vm13, %v3075_v50, %v3085_v52  ;;  %v858_v56 = vsel %vm4626_vm13, %v3076_v49, %v3086_v51  ;;  %v865_v58 = vsel %vm4626_vm13, %v3085_v52, %v3075_v50  ;;  %v866_v16 = vsel %vm4626_vm13, %v3086_v51, %v3076_v49  ;;  %2584 = vmatmul.mubr.msk.bf16.gmra.mrb[12].mxu0 %vm587_vm7, %v3848_v42  ;;  %vm3988_vm13 = vmpackc.low %vm3795_vm12, %vm3795_vm12 }
 0x30f   :  { %v2620_v47 = vpack.c.bf16 %v858_v56, %v857_v55  ;;  %v2623_v18 = vpack.c.bf16 %v866_v16, %v865_v58  ;;  %3128 = vrot.lane.b32.xlu1 %v3637_v3, %s3347_s22  ;;  %v3104_v19 = vpop.permute.xlu0 %3103  ;;  %950 = vmatprep.mubr.bf16.mxu0 %v3342_v1 }
 0x310   :  { %v3106_v22 = vunpack.i.h.bf16 %v3104_v19  ;;  %v3105_v57 = vunpack.i.l.bf16 %v3104_v19 }
 0x311   :  { %2621 = vmatprep.subr.msk.bf16.mxu0 %vm3830_vm0, %v2620_v47 }
 0x312   :  { %2624 = vmatpush1.bf16.msk.msra.mxu0 %vm3836_vm1, %v2623_v18 }
 0x313   :  { %3133 = vrot.lane.b32.xlu1 %v3641_v4, %s3347_s22  ;;  %v3109_v21 = vpop.permute.xlu0 %3108 }
 0x314   :  { %v3111_v24 = vunpack.i.h.bf16 %v3109_v21  ;;  %v3110_v28 = vunpack.i.l.bf16 %v3109_v21 }
 0x316   :  { %v1073_v34 = vsel %vm4625_vm3, %v3105_v57, %v3110_v28  ;;  %v1074_v40 = vsel %vm4625_vm3, %v3106_v22, %v3111_v24  ;;  %v1081_v48 = vsel %vm4625_vm3, %v3110_v28, %v3105_v57  ;;  %v1082_v49 = vsel %vm4625_vm3, %v3111_v24, %v3106_v22  ;;  %2625 = vmatmul.mubr.msk.bf16.vlgmr.msra.gmra.mrb[8].mxu0 %vm587_vm7, %v3872_v20 }
 0x317   :  { %v2648_v51 = vpack.c.bf16 %v1074_v40, %v1073_v34  ;;  %v2651_v52 = vpack.c.bf16 %v1082_v49, %v1081_v48  ;;  %3138 = vrot.lane.b32.xlu1 %v3655_v7, %s3347_s22  ;;  %v3114_v55 = vpop.permute.xlu0 %3113  ;;  %960 = vmatprep.mubr.bf16.mxu0 %v3342_v1  ;;  %v3928_v40 = vld [vmem:[%s4620_s4 + $0x30] sm:$0xff]  }
 0x318   :  { %v3116_v58 = vunpack.i.h.bf16 %v3114_v55  ;;  %v3115_v16 = vunpack.i.l.bf16 %v3114_v55 }
 0x319   :  { %2649 = vmatprep.subr.msk.bf16.mxu0 %vm3758_vm10, %v2648_v51 }
 0x31a   :  { %2652 = vmatpush1.bf16.msk.msra.mxu0 %vm3890_vm9, %v2651_v52 }
 0x31b   :  { %3158 = vrot.lane.b32.xlu1 %v3647_v6, %s3343_s3  ;;  %v3124_v56 = vpop.permute.xlu0 %3123 }
 0x31c   :  { %v3126_v47 = vunpack.i.h.bf16 %v3124_v56  ;;  %v3125_v18 = vunpack.i.l.bf16 %v3124_v56 }
 0x31e   :  { %v1075_v19 = vsel %vm4625_vm3, %v3115_v16, %v3125_v18  ;;  %v1076_v21 = vsel %vm4625_vm3, %v3116_v58, %v3126_v47  ;;  %v1083_v22 = vsel %vm4625_vm3, %v3125_v18, %v3115_v16  ;;  %v1084_v57 = vsel %vm4625_vm3, %v3126_v47, %v3116_v58  ;;  %2626 = vmatmul.mubr.msk.bf16.gmra.mrb[12].mxu0 %vm587_vm7, %v3904_v61 }
 0x31f   :  { %v2654_v24 = vpack.c.bf16 %v1076_v21, %v1075_v19  ;;  %v2657_v28 = vpack.c.bf16 %v1084_v57, %v1083_v22  ;;  %3168 = vrot.lane.b32.xlu1 %v3637_v3, %s3343_s3  ;;  %v3144_v34 = vpop.permute.xlu0 %3143  ;;  %1166 = vmatprep.mubr.bf16.mxu0 %v3342_v1  ;;  %vm419_vm3 = vcmp.lt.s32.totalorder %v3704_v32, 240  ;;  %v2276_v32 = vld [vmem:[%s4621_s7 + $0x8] sm:$0xff] }
 0x320   :  { %v3146_v52 = vunpack.i.h.bf16 %v3144_v34  ;;  %v3145_v55 = vunpack.i.l.bf16 %v3144_v34  ;;  %vm1673_vm12 = vmand %vm419_vm3, %vm3737_vm8  ;;  %vm4629_vm8 = vcmp.lt.s32.totalorder %v3673_v15, 112 }
 0x321   :  { %2655 = vmatprep.subr.msk.bf16.mxu0 %vm3758_vm10, %v2654_v24 }
 0x322   :  { %2658 = vmatpush1.bf16.msk.msra.mxu0 %vm3890_vm9, %v2657_v28 }
 0x323   :  { %3173 = vrot.lane.b32.xlu1 %v3641_v4, %s3343_s3  ;;  %v3149_v48 = vpop.permute.xlu0 %3148  ;;  %1285 = vmatprep.subr.bf16.mxu0 %v1257_v43  ;;  %v3954_v43 = vld [vmem:[%s4620_s4 + $0x38] sm:$0xff]  }
 0x324   :  { %v3151_v49 = vunpack.i.h.bf16 %v3149_v48  ;;  %v3150_v51 = vunpack.i.l.bf16 %v3149_v48 }
 0x326   :  { %2659 = vmatmul.mubr.msk.bf16.vlgmr.msra.gmra.mrb[8].mxu0 %vm587_vm7, %v3928_v40  ;;  %v1448_v56 = vsel %vm4627_vm5, %v3150_v51, %v3145_v55  ;;  %v1449_v58 = vsel %vm4627_vm5, %v3151_v49, %v3146_v52  ;;  %v1440_v25 = vsel %vm4627_vm5, %v3145_v55, %v3150_v51  ;;  %v1441_v27 = vsel %vm4627_vm5, %v3146_v52, %v3151_v49 }
 0x327   :  { %3178 = vrot.lane.b32.xlu1 %v3655_v7, %s3343_s3  ;;  %1286 = vmatpush1.bf16.msra.mxu0 %v1256_v44  ;;  %v3154_v36 = vpop.permute.xlu0 %3153  ;;  %v2692_v38 = vpack.c.bf16 %v1449_v58, %v1448_v56  ;;  %v2695_v28 = vpack.c.bf16 %v1441_v27, %v1440_v25  ;;  %v4040_v25 = vld [vmem:[%s4620_s4 + $0x50] sm:$0xff]  }
 0x328   :  { %1287 = vmatprep.subr.bf16.mxu0 %v1259_v45  ;;  %1176 = vmatprep.mubr.bf16.mxu0 %v3342_v1  ;;  %v3156_v44 = vunpack.i.h.bf16 %v3154_v36  ;;  %v3155_v45 = vunpack.i.l.bf16 %v3154_v36 }
 0x32b   :  { %3198 = vrot.lane.b32.xlu1 %v3647_v6, %s3348_s23  ;;  %1288 = vmatpush1.bf16.msra.mxu0 %v1258_v46  ;;  %v3164_v33 = vpop.permute.xlu0 %3163  ;;  %v3975_v46 = vld [vmem:[%s4620_s4 + $0x40] sm:$0xff]  }
 0x32c   :  { %2693 = vmatprep.subr.msk.bf16.mxu0 %vm3830_vm0, %v2692_v38  ;;  %v3166_v35 = vunpack.i.h.bf16 %v3164_v33  ;;  %v3165_v37 = vunpack.i.l.bf16 %v3164_v33 }
 0x32e   :  { %2660 = vmatmul.mubr.msk.bf16.gmra.mrb[12].mxu0 %vm587_vm7, %v3954_v43  ;;  %v1450_v16 = vsel %vm4627_vm5, %v3165_v37, %v3155_v45  ;;  %v1451_v47 = vsel %vm4627_vm5, %v3166_v35, %v3156_v44  ;;  %v1442_v34 = vsel %vm4627_vm5, %v3155_v45, %v3165_v37  ;;  %v1443_v48 = vsel %vm4627_vm5, %v3156_v44, %v3166_v35  ;;  %vm4013_vm5 = vmpackc.low %vm1673_vm12, %vm1673_vm12 }
 0x32f   :  { %3208 = vrot.lane.b32.xlu1 %v3637_v3, %s3348_s23  ;;  %v3184_v39 = vpop.permute.xlu0 %3183  ;;  %1317 = vmatprep.mubr.bf16.mxu0 %v3342_v1  ;;  %v2698_v49 = vpack.c.bf16 %v1451_v47, %v1450_v16  ;;  %v2701_v56 = vpack.c.bf16 %v1443_v48, %v1442_v34  ;;  %vm4069_vm12 = vmpackc.low %vm419_vm3, %vm419_vm3 }
 0x330   :  { %v3186_v21 = vunpack.i.h.bf16 %v3184_v39  ;;  %v3185_v22 = vunpack.i.l.bf16 %v3184_v39 }
 0x333   :  { %3213 = vrot.lane.b32.xlu1 %v3641_v4, %s3348_s23  ;;  %v3189_v18 = vpop.permute.xlu0 %3188 }
 0x334   :  { %v3191_v57 = vunpack.i.h.bf16 %v3189_v18  ;;  %v3190_v24 = vunpack.i.l.bf16 %v3189_v18 }
 0x336   :  { %v1664_v12 = vsel %vm4628_vm15, %v3190_v24, %v3185_v22  ;;  %v1665_v51 = vsel %vm4628_vm15, %v3191_v57, %v3186_v21  ;;  %2681 = vmatmul.mubr.msk.bf16.vlgmr.msra.gmra.mrb[8].mxu0 %vm587_vm7, %v3975_v46  ;;  %v1656_v44 = vsel %vm4628_vm15, %v3185_v22, %v3190_v24  ;;  %v1657_v45 = vsel %vm4628_vm15, %v3186_v21, %v3191_v57 }
 0x337   :  { %2696 = vmatpush1.bf16.msk.msra.mxu0 %vm3988_vm13, %v2695_v28  ;;  %3218 = vrot.lane.b32.xlu1 %v3655_v7, %s3348_s23  ;;  %v3194_v52 = vpop.permute.xlu0 %3193  ;;  %v2726_v55 = vpack.c.bf16 %v1665_v51, %v1664_v12  ;;  %v2729_v24 = vpack.c.bf16 %v1657_v45, %v1656_v44 }
 0x338   :  { %2699 = vmatprep.subr.msk.bf16.mxu0 %vm3830_vm0, %v2698_v49  ;;  %1327 = vmatprep.mubr.bf16.mxu0 %v3342_v1  ;;  %v3196_v37 = vunpack.i.h.bf16 %v3194_v52  ;;  %v3195_v39 = vunpack.i.l.bf16 %v3194_v52 }
 0x33b   :  { %2702 = vmatpush1.bf16.msk.msra.mxu0 %vm3988_vm13, %v2701_v56  ;;  %3238 = vrot.lane.b32.xlu1 %v3647_v6, %s3349_s24  ;;  %v3204_v36 = vpop.permute.xlu0 %3203 }
 0x33c   :  { %2727 = vmatprep.subr.msk.bf16.mxu0 %vm4013_vm5, %v2726_v55  ;;  %v3206_v38 = vunpack.i.h.bf16 %v3204_v36  ;;  %v3205_v33 = vunpack.i.l.bf16 %v3204_v36  ;;  %v4076_v36 = vld [vmem:[%s4620_s4 + $0x58] sm:$0xff]  }
 0x33e   :  { %2682 = vmatmul.mubr.msk.bf16.gmra.mrb[12].mxu0 %vm587_vm7, %v4020_v13  ;;  %v1666_v27 = vsel %vm4628_vm15, %v3205_v33, %v3195_v39  ;;  %v1667_v16 = vsel %vm4628_vm15, %v3206_v38, %v3196_v37  ;;  %v1658_v28 = vsel %vm4628_vm15, %v3195_v39, %v3205_v33  ;;  %v1659_v34 = vsel %vm4628_vm15, %v3196_v37, %v3206_v38 }
 0x33f   :  { %3248 = vrot.lane.b32.xlu1 %v3637_v3, %s3349_s24  ;;  %v3224_v35 = vpop.permute.xlu0 %3223  ;;  %1533 = vmatprep.mubr.bf16.mxu0 %v3342_v1  ;;  %v2732_v48 = vpack.c.bf16 %v1667_v16, %v1666_v27  ;;  %v2735_v55 = vpack.c.bf16 %v1659_v34, %v1658_v28  ;;  %vm2089_vm15 = vcmp.lt.s32.totalorder %v3673_v15, 111 }
 0x340   :  { %v3226_v18 = vunpack.i.h.bf16 %v3224_v35  ;;  %v3225_v22 = vunpack.i.l.bf16 %v3224_v35 }
 0x343   :  { %3253 = vrot.lane.b32.xlu1 %v3641_v4, %s3349_s24  ;;  %v3229_v47 = vpop.permute.xlu0 %3228 }
 0x344   :  { %v3231_v21 = vunpack.i.h.bf16 %v3229_v47  ;;  %v3230_v57 = vunpack.i.l.bf16 %v3229_v47 }
 0x346   :  { %v1882_v49 = vsel %vm4629_vm8, %v3230_v57, %v3225_v22  ;;  %v1883_v12 = vsel %vm4629_vm8, %v3231_v21, %v3226_v18  ;;  %2703 = vmatmul.mubr.msk.bf16.vlgmr.msra.gmra.mrb[8].mxu0 %vm587_vm7, %v4040_v25  ;;  %v1874_v35 = vsel %vm4629_vm8, %v3225_v22, %v3230_v57  ;;  %v1875_v37 = vsel %vm4629_vm8, %v3226_v18, %v3231_v21  ;;  %v4099_v22 = vld [vmem:[%s4620_s4 + $0x60] sm:$0xff]  }
 0x347   :  { %2730 = vmatpush1.bf16.msk.msra.mxu0 %vm3890_vm9, %v2729_v24  ;;  %3258 = vrot.lane.b32.xlu1 %v3655_v7, %s3349_s24  ;;  %v3234_v51 = vpop.permute.xlu0 %3233  ;;  %v2760_v52 = vpack.c.bf16 %v1883_v12, %v1882_v49  ;;  %v1906_v47 = vpack.c.bf16 %v1875_v37, %v1874_v35 }
 0x348   :  { %2733 = vmatprep.subr.msk.bf16.mxu0 %vm4013_vm5, %v2732_v48  ;;  %1543 = vmatprep.mubr.bf16.mxu0 %v3342_v1  ;;  %v3236_v27 = vunpack.i.h.bf16 %v3234_v51  ;;  %v3235_v16 = vunpack.i.l.bf16 %v3234_v51 }
 0x34b   :  { %2736 = vmatpush1.bf16.msk.msra.mxu0 %vm3890_vm9, %v2735_v55  ;;  %3278 = vrot.lane.b32.xlu1 %v3647_v6, %s3350_s0  ;;  %v3244_v38 = vpop.permute.xlu0 %3243 }
 0x34c   :  { %2761 = vmatprep.subr.msk.bf16.mxu0 %vm4069_vm12, %v2760_v52  ;;  %v3004_v33 = vpop.permute.xlu1 %3003  ;;  %v3246_v39 = vunpack.i.h.bf16 %v3244_v38  ;;  %v3245_v44 = vunpack.i.l.bf16 %v3244_v38 }
 0x34e   :  { %2704 = vmatmul.mubr.msk.bf16.gmra.mrb[12].mxu0 %vm587_vm7, %v4076_v36  ;;  %v1876_v18 = vsel %vm4629_vm8, %v3235_v16, %v3245_v44  ;;  %v1884_v21 = vsel %vm4629_vm8, %v3245_v44, %v3235_v16  ;;  %v1885_v57 = vsel %vm4629_vm8, %v3246_v39, %v3236_v27  ;;  %v3005_v16 = vunpack.i.l.bf16 %v3004_v33 }
 0x34f   :  { %3288 = vrot.lane.b32.xlu1 %v3637_v3, %s3350_s0  ;;  %v4092_v6 = vpop.permute.xlu0 %3263  ;;  %1751 = vmatprep.mubr.bf16.mxu0 %v3342_v1  ;;  %v1877_v3 = vsel %vm4629_vm8, %v3236_v27, %v3246_v39  ;;  %v2763_v35 = vpack.c.bf16 %v1885_v57, %v1884_v21  ;;  %vm2107_vm8 = vmand %vm419_vm3, %vm3809_vm14 }
 0x350   :  { %v3009_v45 = vpop.permute.xlu1 %3008  ;;  %v3266_v28 = vunpack.i.h.bf16 %v4092_v6  ;;  %v3265_v34 = vunpack.i.l.bf16 %v4092_v6  ;;  %v1908_v27 = vpack.c.bf16 %v1877_v3, %v1876_v18  ;;  %vm4139_vm14 = vmpackc.low %vm2107_vm8, %vm2107_vm8  ;;  %v4146_v18 = vld [vmem:[%s4620_s4 + $0x68] sm:$0xff]  }
 0x351   :  { %v3011_v51 = vunpack.i.h.bf16 %v3009_v45  ;;  %v3010_v52 = vunpack.i.l.bf16 %v3009_v45 }
 0x353   :  { %3293 = vrot.lane.b32.xlu1 %v3641_v4, %s3350_s0  ;;  %v3269_v24 = vpop.permute.xlu0 %3268  ;;  %v3006_v4 = vunpack.i.h.bf16 %v3004_v33 }
 0x354   :  { %v3271_v48 = vunpack.i.h.bf16 %v3269_v24  ;;  %v3270_v49 = vunpack.i.l.bf16 %v3269_v24  ;;  %v3014_v12 = vpop.permute.xlu1 %3013 }
 0x355   :  { %v3016_v55 = vunpack.i.h.bf16 %v3014_v12  ;;  %v3015_v38 = vunpack.i.l.bf16 %v3014_v12 }
 0x356   :  { %v2098_v37 = vsel %vm2089_vm15, %v3270_v49, %v3265_v34  ;;  %v2099_v39 = vsel %vm2089_vm15, %v3271_v48, %v3266_v28  ;;  %2737 = vmatmul.mubr.msk.bf16.vlgmr.msra.gmra.mrb[8].mxu0 %vm587_vm7, %v4099_v22 }
 0x357   :  { %v544_v44 = vsel %vm531_vm2, %v3015_v38, %v3010_v52  ;;  %v545_v6 = vsel %vm531_vm2, %v3016_v55, %v3011_v51  ;;  %1936 = vmatpush1.bf16.msra.mxu0 %v1906_v47  ;;  %v3274_v45 = vpop.permute.xlu0 %3273  ;;  %v2782_v21 = vpack.c.bf16 %v2099_v39, %v2098_v37  ;;  %3298 = vrot.lane.b32.xlu1 %v3655_v7, %s3350_s0 }
 0x358   :  { %2764 = vmatprep.subr.msk.bf16.mxu0 %vm4069_vm12, %v2763_v35  ;;  %v3019_v57 = vpop.permute.xlu1 %3018  ;;  %v536_v24 = vsel %vm531_vm2, %v3010_v52, %v3015_v38  ;;  %v2586_v47 = vpack.c.bf16 %v545_v6, %v544_v44  ;;  %v537_v17 = vsel %vm531_vm2, %v3011_v51, %v3016_v55  ;;  %1761 = vmatprep.mubr.bf16.mxu0 %v3342_v1  ;;  %v2278_v44 = vld [vmem:[%s4621_s7 + $0x18] sm:$0xff] }
 0x359   :  { %v3021_v12 = vunpack.i.h.bf16 %v3019_v57  ;;  %v3020_v11 = vunpack.i.l.bf16 %v3019_v57  ;;  %v569_v7 = vpack.c.bf16 %v537_v17, %v536_v24  ;;  %v3275_v57 = vunpack.i.l.bf16 %v3274_v45  ;;  %v4175_v24 = vld [vmem:[%s4620_s4 + $0x70] sm:$0xff]  }
 0x35b   :  { %v547_v3 = vsel %vm531_vm2, %v3021_v12, %v3006_v4  ;;  %v546_v52 = vsel %vm531_vm2, %v3020_v11, %v3005_v16  ;;  %1938 = vmatpush1.bf16.msra.mxu0 %v1908_v27  ;;  %v538_v51 = vsel %vm531_vm2, %v3005_v16, %v3020_v11  ;;  %v539_v55 = vsel %vm531_vm2, %v3006_v4, %v3021_v12  ;;  %v3284_v38 = vpop.permute.xlu0 %3283 }
 0x35c   :  { %2286 = vperm.xlu1 %2981, %v2276_v32   ;;  %716 = vmatprep.subr.bf16.mxu1 %v569_v7  ;;  %v3039_v35 = vpop.permute.xlu1 %3038  ;;  %v571_v37 = vpack.c.bf16 %v539_v55, %v538_v51  ;;  %v2589_v39 = vpack.c.bf16 %v547_v3, %v546_v52  ;;  %v3286_v11 = vunpack.i.h.bf16 %v3284_v38  ;;  %v3285_v4 = vunpack.i.l.bf16 %v3284_v38 }
 0x35d   :  { %2783 = vmatprep.subr.msk.bf16.mxu0 %vm4139_vm14, %v2782_v21  ;;  %2587 = vmatpush1.bf16.msk.msra.mxu1 %vm3699_vm4, %v2586_v47  ;;  %v2090_v27 = vsel %vm2089_vm15, %v3265_v34, %v3270_v49  ;;  %v2091_v16 = vsel %vm2089_vm15, %v3266_v28, %v3271_v48  ;;  %v3276_v21 = vunpack.i.h.bf16 %v3274_v45  ;;  %vm4658_vm2 = vcmp.lt.s32.totalorder %v3673_v15, 15 }
 0x35e   :  { %2738 = vmatmul.mubr.msk.bf16.gmra.mrb[12].mxu0 %vm587_vm7, %v4146_v18  ;;  %718 = vmatprep.subr.bf16.mxu1 %v571_v37  ;;  %v2100_v47 = vsel %vm2089_vm15, %v3285_v4, %v3275_v57  ;;  %v2785_v34 = vpack.c.bf16 %v2091_v16, %v2090_v27  ;;  %v2092_v32 = vsel %vm2089_vm15, %v3275_v57, %v3285_v4  ;;  %v4208_v27 = vld [vmem:[%s4620_s4 + $0x78] sm:$0xff]   ;;  %vm4662_vm3 = vmmov %vm4658_vm2 }
 0x35f   :  { %1967 = vmatprep.mubr.bf16.mxu0 %v3342_v1  ;;  %v2101_v12 = vsel %vm2089_vm15, %v3286_v11, %v3276_v21  ;;  %v2093_v17 = vsel %vm2089_vm15, %v3276_v21, %v3286_v11  ;;  %v3040_v11 = vunpack.i.l.bf16 %v3039_v35  ;;  %vm4663_vm8 = vmmov %vm4658_vm2 }
 0x360   :  { %2296 = vperm.xlu1 %2981, %v2278_v44   ;;  %v3049_v6 = vpop.permute.xlu1 %3048  ;;  %v2788_v7 = vpack.c.bf16 %v2101_v12, %v2100_v47  ;;  %v2791_v37 = vpack.c.bf16 %v2093_v17, %v2092_v32  ;;  %v3041_v44 = vunpack.i.h.bf16 %v3039_v35 }
 0x361   :  { %2590 = vmatpush1.bf16.msk.msra.mxu1 %vm3699_vm4, %v2589_v39  ;;  %v3051_v48 = vunpack.i.h.bf16 %v3049_v6  ;;  %v3050_v49 = vunpack.i.l.bf16 %v3049_v6  ;;  %vm4659_vm4 = vmmov %vm4658_vm2 }
 0x364   :  { %2591 = vmatmul.mubr.msk.bf16.vlgmr.msra.gmra.mrb[4].mxu1 %vm587_vm7, %v3732_v62  ;;  %v3054_v28 = vpop.permute.xlu1 %3053 }
 0x365   :  { %v3056_v31 = vunpack.i.h.bf16 %v3054_v28  ;;  %v3055_v45 = vunpack.i.l.bf16 %v3054_v28  ;;  %758 = vmatprep.mubr.bf16.mxu1 %v3342_v1 }
 0x366   :  { %2765 = vmatmul.mubr.msk.bf16.vlgmr.msra.gmra.mrb[8].mxu0 %vm587_vm7, %v4175_v24 }
 0x367   :  { %v457_v62 = vsel %vm452_vm6, %v3050_v49, %v3055_v45  ;;  %v458_v3 = vsel %vm452_vm6, %v3051_v48, %v3056_v31  ;;  %v465_v52 = vsel %vm452_vm6, %v3055_v45, %v3050_v49  ;;  %v466_v51 = vsel %vm452_vm6, %v3056_v31, %v3051_v48  ;;  %2786 = vmatpush1.bf16.msk.msra.mxu0 %vm3988_vm13, %v2785_v34 }
 0x368   :  { %v2594_v55 = vpack.c.bf16 %v458_v3, %v457_v62  ;;  %v2597_v38 = vpack.c.bf16 %v466_v51, %v465_v52  ;;  %2789 = vmatprep.subr.msk.bf16.mxu0 %vm4139_vm14, %v2788_v7  ;;  %1977 = vmatprep.mubr.bf16.mxu0 %v3342_v1 }
 0x369   :  { %v3059_v39 = vpop.permute.xlu1 %3058 }
 0x36a   :  { %v3061_v4 = vunpack.i.h.bf16 %v3059_v39  ;;  %v3060_v6 = vunpack.i.l.bf16 %v3059_v39  ;;  %2595 = vmatprep.subr.msk.bf16.mxu1 %vm3758_vm10, %v2594_v55  ;;  %v4254_v39 = vld [vmem:[%s4620_s4 + $0x88] sm:$0xff]  }
 0x36b   :  { %2792 = vmatpush1.bf16.msk.msra.mxu0 %vm3988_vm13, %v2791_v37  ;;  %2598 = vmatpush1.bf16.msk.msra.mxu1 %vm3764_vm11, %v2597_v38 }
 0x36c   :  { %v459_v16 = vsel %vm452_vm6, %v3040_v11, %v3060_v6  ;;  %v460_v35 = vsel %vm452_vm6, %v3041_v44, %v3061_v4  ;;  %v467_v21 = vsel %vm452_vm6, %v3060_v6, %v3040_v11  ;;  %v468_v57 = vsel %vm452_vm6, %v3061_v4, %v3041_v44  ;;  %2592 = vmatmul.mubr.msk.bf16.gmra.mrb[8].mxu1 %vm587_vm7, %v3776_v30  ;;  %v4235_v30 = vld [vmem:[%s4620_s4 + $0x80] sm:$0xff]   ;;  %vm4660_vm6 = vmmov %vm4658_vm2 }
 0x36d   :  { %v2600_v47 = vpack.c.bf16 %v460_v35, %v459_v16  ;;  %v2603_v12 = vpack.c.bf16 %v468_v57, %v467_v21  ;;  %v3079_v34 = vpop.permute.xlu1 %3078  ;;  %801 = vmatprep.mubr.bf16.mxu1 %v3342_v1 }
 0x36e   :  { %2766 = vmatmul.mubr.msk.bf16.gmra.mrb[12].mxu0 %vm587_vm7, %v4208_v27  ;;  %v3081_v51 = vunpack.i.h.bf16 %v3079_v34  ;;  %v3080_v55 = vunpack.i.l.bf16 %v3079_v34 }
 0x36f   :  { %2601 = vmatprep.subr.msk.bf16.mxu1 %vm3758_vm10, %v2600_v47  ;;  %2185 = vmatprep.mubr.bf16.mxu0 %v3342_v1 }
 0x370   :  { %2604 = vmatpush1.bf16.msk.msra.mxu1 %vm3764_vm11, %v2603_v12  ;;  %vm4661_vm11 = vmmov %vm4658_vm2 }
 0x371   :  { %v3089_v28 = vpop.permute.xlu1 %3088 }
 0x372   :  { %v3091_v49 = vunpack.i.h.bf16 %v3089_v28  ;;  %v3090_v31 = vunpack.i.l.bf16 %v3089_v28 }
 0x374   :  { %2605 = vmatmul.mubr.msk.bf16.vlgmr.msra.gmra.mrb[4].mxu1 %vm587_vm7, %v3804_v14 }
 0x375   :  { %v3094_v48 = vpop.permute.xlu1 %3093  ;;  %811 = vmatprep.mubr.bf16.mxu1 %v3342_v1 }
 0x376   :  { %v3096_v45 = vunpack.i.h.bf16 %v3094_v48  ;;  %v3095_v32 = vunpack.i.l.bf16 %v3094_v48  ;;  %2793 = vmatmul.mubr.msk.bf16.vlgmr.msra.gmra.mrb[8].mxu0 %vm587_vm7, %v4235_v30 }
 0x377   :  { %2195 = vmatprep.mubr.bf16.mxu0 %v3342_v1 }
 0x378   :  { %v859_v29 = vsel %vm4658_vm2, %v3090_v31, %v3095_v32  ;;  %v860_v17 = vsel %vm4659_vm4, %v3091_v49, %v3096_v45  ;;  %v867_v14 = vsel %vm4660_vm6, %v3095_v32, %v3090_v31  ;;  %v868_v7 = vsel %vm4661_vm11, %v3096_v45, %v3091_v49  ;;  %vm4664_vm4 = vmmov %vm4658_vm2 }
 0x379   :  { %v2628_v62 = vpack.c.bf16 %v860_v17, %v859_v29  ;;  %v2631_v3 = vpack.c.bf16 %v868_v7, %v867_v14  ;;  %v3099_v52 = vpop.permute.xlu1 %3098  ;;  %vm4665_vm6 = vcmp.lt.s32.totalorder %v3673_v15, 1 }
 0x37a   :  { %v3101_v38 = vunpack.i.h.bf16 %v3099_v52  ;;  %v3100_v37 = vunpack.i.l.bf16 %v3099_v52  ;;  %vm4666_vm11 = vmmov %vm4665_vm6 }
 0x37b   :  { %2629 = vmatprep.subr.msk.bf16.mxu1 %vm3830_vm0, %v2628_v62 }
 0x37c   :  { %v861_v44 = vsel %vm4662_vm3, %v3080_v55, %v3100_v37  ;;  %v862_v11 = vsel %vm4663_vm8, %v3081_v51, %v3101_v38  ;;  %v869_v4 = vsel %vm4658_vm2, %v3100_v37, %v3080_v55  ;;  %v870_v6 = vsel %vm4664_vm4, %v3101_v38, %v3081_v51  ;;  %2606 = vmatmul.mubr.msk.bf16.gmra.mrb[8].mxu1 %vm587_vm7, %v3848_v42  ;;  %vm4667_vm3 = vmmov %vm4665_vm6 }
 0x37d   :  { %v2634_v16 = vpack.c.bf16 %v862_v11, %v861_v44  ;;  %v2637_v35 = vpack.c.bf16 %v870_v6, %v869_v4  ;;  %2632 = vmatpush1.bf16.msk.msra.mxu1 %vm3836_vm1, %v2631_v3  ;;  %v3119_v21 = vpop.permute.xlu1 %3118  ;;  %1011 = vmatprep.mubr.bf16.mxu1 %v3342_v1 }
 0x37e   :  { %2794 = vmatmul.mubr.msk.bf16.gmra.mrb[12].mxu0 %vm587_vm7, %v4254_v39  ;;  %v3121_v29 = vunpack.i.h.bf16 %v3119_v21  ;;  %v3120_v17 = vunpack.i.l.bf16 %v3119_v21 }
 0x37f   :  { %2635 = vmatprep.subr.msk.bf16.mxu1 %vm3830_vm0, %v2634_v16 }
 0x381   :  { %2638 = vmatpush1.bf16.msk.msra.mxu1 %vm3836_vm1, %v2637_v35  ;;  %v3129_v57 = vpop.permute.xlu1 %3128  ;;  %vm4668_vm1 = vmmov %vm4667_vm3 }
 0x382   :  { %v3131_v47 = vunpack.i.h.bf16 %v3129_v57  ;;  %v3130_v12 = vunpack.i.l.bf16 %v3129_v57  ;;  %vm4669_vm8 = vmmov %vm4668_vm1 }
 0x383   :  { %vm4670_vm2 = vmmov %vm4668_vm1 }
 0x384   :  { %2639 = vmatmul.mubr.msk.bf16.vlgmr.msra.gmra.mrb[4].mxu1 %vm587_vm7, %v3872_v20  ;;  %vm4671_vm4 = vmmov %vm4668_vm1 }
 0x385   :  { %v3134_v42 = vpop.permute.xlu1 %3133  ;;  %1021 = vmatprep.mubr.bf16.mxu1 %v3342_v1 }
 0x386   :  { %v3136_v34 = vunpack.i.h.bf16 %v3134_v42  ;;  %v3135_v28 = vunpack.i.l.bf16 %v3134_v42 }
 0x388   :  { %v1077_v48 = vsel %vm4665_vm6, %v3130_v12, %v3135_v28  ;;  %v1078_v49 = vsel %vm4666_vm11, %v3131_v47, %v3136_v34  ;;  %v1085_v41 = vsel %vm4667_vm3, %v3135_v28, %v3130_v12  ;;  %v1086_v31 = vsel %vm4668_vm1, %v3136_v34, %v3131_v47  ;;  %vm4672_vm6 = vmmov %vm4668_vm1 }
 0x389   :  { %v2662_v20 = vpack.c.bf16 %v1078_v49, %v1077_v48  ;;  %v2665_v45 = vpack.c.bf16 %v1086_v31, %v1085_v41  ;;  %v3139_v32 = vpop.permute.xlu1 %3138 }
 0x38a   :  { %v3141_v14 = vunpack.i.h.bf16 %v3139_v32  ;;  %v3140_v7 = vunpack.i.l.bf16 %v3139_v32 }
 0x38b   :  { %2663 = vmatprep.subr.msk.bf16.mxu1 %vm3758_vm10, %v2662_v20 }
 0x38c   :  { %v1079_v62 = vsel %vm4669_vm8, %v3120_v17, %v3140_v7  ;;  %v1080_v3 = vsel %vm4670_vm2, %v3121_v29, %v3141_v14  ;;  %v1087_v52 = vsel %vm4671_vm4, %v3140_v7, %v3120_v17  ;;  %v1088_v51 = vsel %vm4672_vm6, %v3141_v14, %v3121_v29  ;;  %2640 = vmatmul.mubr.msk.bf16.gmra.mrb[8].mxu1 %vm587_vm7, %v3904_v61 }
 0x38d   :  { %v2668_v55 = vpack.c.bf16 %v1080_v3, %v1079_v62  ;;  %v2671_v38 = vpack.c.bf16 %v1088_v51, %v1087_v52  ;;  %2666 = vmatpush1.bf16.msk.msra.mxu1 %vm3890_vm9, %v2665_v45  ;;  %v3159_v37 = vpop.permute.xlu1 %3158  ;;  %1227 = vmatprep.mubr.bf16.mxu1 %v3342_v1 }
 0x38f   :  { %2669 = vmatprep.subr.msk.bf16.mxu1 %vm3758_vm10, %v2668_v55  ;;  %vm4673_vm10 = vcmp.lt.s32.totalorder %v3673_v15, 127 }
 0x390   :  { %vm4674_vm11 = vmmov %vm4673_vm10 }
 0x391   :  { %2672 = vmatpush1.bf16.msk.msra.mxu1 %vm3890_vm9, %v2671_v38  ;;  %v3169_v44 = vpop.permute.xlu1 %3168  ;;  %vm4676_vm3 = vmmov %vm4673_vm10 }
 0x392   :  { %1346 = vmatprep.subr.bf16.mxu1 %v1261_v8  ;;  %v3171_v23 = vunpack.i.h.bf16 %v3169_v44  ;;  %v3170_v11 = vunpack.i.l.bf16 %v3169_v44  ;;  %vm4677_vm1 = vmmov %vm4676_vm3 }
 0x393   :  { %vm4678_vm8 = vmmov %vm4677_vm1 }
 0x394   :  { %2673 = vmatmul.mubr.msk.bf16.vlgmr.msra.gmra.mrb[4].mxu1 %vm587_vm7, %v3928_v40  ;;  %v3160_v40 = vunpack.i.l.bf16 %v3159_v37  ;;  %vm4679_vm2 = vmmov %vm4677_vm1 }
 0x395   :  { %1347 = vmatpush1.bf16.msra.mxu1 %v1260_v9  ;;  %v3174_v61 = vpop.permute.xlu1 %3173  ;;  %1237 = vmatprep.mubr.bf16.mxu1 %v3342_v1  ;;  %vm4680_vm4 = vmmov %vm4677_vm1 }
 0x396   :  { %v3176_v4 = vunpack.i.h.bf16 %v3174_v61  ;;  %v3175_v6 = vunpack.i.l.bf16 %v3174_v61  ;;  %1348 = vmatprep.subr.bf16.mxu1 %v1263_v10  ;;  %v3161_v10 = vunpack.i.h.bf16 %v3159_v37  ;;  %vm4681_vm6 = vmmov %vm4677_vm1 }
 0x398   :  { %v1452_v54 = vsel %vm4673_vm10, %v3175_v6, %v3170_v11  ;;  %v1453_v60 = vsel %vm4674_vm11, %v3176_v4, %v3171_v23  ;;  %v1444_v16 = vsel %vm4676_vm3, %v3170_v11, %v3175_v6  ;;  %v1445_v63 = vsel %vm4677_vm1, %v3171_v23, %v3176_v4 }
 0x399   :  { %v2706_v8 = vpack.c.bf16 %v1453_v60, %v1452_v54  ;;  %1349 = vmatpush1.bf16.msra.mxu1 %v4675_v53  ;;  %v3179_v59 = vpop.permute.xlu1 %3178  ;;  %v2709_v21 = vpack.c.bf16 %v1445_v63, %v1444_v16  ;;  %vm4682_vm10 = vcmp.lt.s32.totalorder %v3673_v15, 113 }
 0x39a   :  { %v3181_v2 = vunpack.i.h.bf16 %v3179_v59  ;;  %v3180_v5 = vunpack.i.l.bf16 %v3179_v59  ;;  %vm4683_vm11 = vmmov %vm4682_vm10 }
 0x39b   :  { %2707 = vmatprep.subr.msk.bf16.mxu1 %vm3830_vm0, %v2706_v8 }
 0x39c   :  { %2674 = vmatmul.mubr.msk.bf16.gmra.mrb[8].mxu1 %vm587_vm7, %v3954_v43  ;;  %v1454_v0 = vsel %vm4678_vm8, %v3180_v5, %v3160_v40  ;;  %v1455_v35 = vsel %vm4679_vm2, %v3181_v2, %v3161_v10  ;;  %v1446_v57 = vsel %vm4680_vm4, %v3160_v40, %v3180_v5  ;;  %v1447_v42 = vsel %vm4681_vm6, %v3161_v10, %v3181_v2 }
 0x39d   :  { %v3199_v9 = vpop.permute.xlu1 %3198  ;;  %1378 = vmatprep.mubr.bf16.mxu1 %v3342_v1  ;;  %v2712_v47 = vpack.c.bf16 %v1455_v35, %v1454_v0  ;;  %v2715_v41 = vpack.c.bf16 %v1447_v42, %v1446_v57  ;;  %vm4690_vm6 = vcmp.lt.s32.totalorder %v3673_v15, 112  ;;  %v2282_v15 = vpop.permute.xlu0 %2281 }
 0x39e   :  { %v3201_v17 = vunpack.i.h.bf16 %v3199_v9  ;;  %v3200_v14 = vunpack.i.l.bf16 %v3199_v9 }
 0x3a1   :  { %v3209_v43 = vpop.permute.xlu1 %3208 }
 0x3a2   :  { %v3211_v34 = vunpack.i.h.bf16 %v3209_v43  ;;  %v3210_v28 = vunpack.i.l.bf16 %v3209_v43 }
 0x3a4   :  { %2683 = vmatmul.mubr.msk.bf16.vlgmr.msra.gmra.mrb[4].mxu1 %vm587_vm7, %v3975_v46 }
 0x3a5   :  { %2710 = vmatpush1.bf16.msk.msra.mxu1 %vm3988_vm13, %v2709_v21  ;;  %v3214_v12 = vpop.permute.xlu1 %3213  ;;  %1388 = vmatprep.mubr.bf16.mxu1 %v3342_v1 }
 0x3a6   :  { %2713 = vmatprep.subr.msk.bf16.mxu1 %vm3830_vm0, %v2712_v47  ;;  %v3216_v48 = vunpack.i.h.bf16 %v3214_v12  ;;  %v3215_v49 = vunpack.i.l.bf16 %v3214_v12  ;;  %vm4684_vm0 = vmmov %vm4682_vm10 }
 0x3a7   :  { %vm4685_vm3 = vmmov %vm4684_vm0 }
 0x3a8   :  { %v1668_v31 = vsel %vm4682_vm10, %v3215_v49, %v3210_v28  ;;  %v1669_v46 = vsel %vm4683_vm11, %v3216_v48, %v3211_v34  ;;  %v1660_v7 = vsel %vm4684_vm0, %v3210_v28, %v3215_v49  ;;  %v1661_v62 = vsel %vm4685_vm3, %v3211_v34, %v3216_v48  ;;  %vm4686_vm1 = vmmov %vm4684_vm0 }
 0x3a9   :  { %v2740_v20 = vpack.c.bf16 %v1669_v46, %v1668_v31  ;;  %2716 = vmatpush1.bf16.msk.msra.mxu1 %vm3988_vm13, %v2715_v41  ;;  %v3219_v45 = vpop.permute.xlu1 %3218  ;;  %vm4687_vm8 = vmmov %vm4684_vm0  ;;  %v2743_v51 = vpack.c.bf16 %v1661_v62, %v1660_v7 }
 0x3aa   :  { %v3221_v26 = vunpack.i.h.bf16 %v3219_v45  ;;  %v3220_v32 = vunpack.i.l.bf16 %v3219_v45  ;;  %vm4688_vm2 = vmmov %vm4684_vm0 }
 0x3ab   :  { %2741 = vmatprep.subr.msk.bf16.mxu1 %vm4013_vm5, %v2740_v20  ;;  %vm4689_vm4 = vmmov %vm4684_vm0 }
 0x3ac   :  { %2684 = vmatmul.mubr.msk.bf16.gmra.mrb[8].mxu1 %vm587_vm7, %v4020_v13  ;;  %v1670_v3 = vsel %vm4686_vm1, %v3220_v32, %v3200_v14  ;;  %v1671_v52 = vsel %vm4687_vm8, %v3221_v26, %v3201_v17  ;;  %v1662_v55 = vsel %vm4688_vm2, %v3200_v14, %v3220_v32  ;;  %v1663_v38 = vsel %vm4689_vm4, %v3201_v17, %v3221_v26  ;;  %vm4691_vm10 = vmmov %vm4690_vm6 }
 0x3ad   :  { %v3239_v29 = vpop.permute.xlu1 %3238  ;;  %1594 = vmatprep.mubr.bf16.mxu1 %v3342_v1  ;;  %v2746_v37 = vpack.c.bf16 %v1671_v52, %v1670_v3  ;;  %v2749_v6 = vpack.c.bf16 %v1663_v38, %v1662_v55 }
 0x3ae   :  { %v3241_v2 = vunpack.i.h.bf16 %v3239_v29  ;;  %v3240_v5 = vunpack.i.l.bf16 %v3239_v29 }
 0x3b1   :  { %v3249_v13 = vpop.permute.xlu1 %3248 }
 0x3b2   :  { %v3251_v61 = vunpack.i.h.bf16 %v3249_v13  ;;  %v3250_v23 = vunpack.i.l.bf16 %v3249_v13 }
 0x3b4   :  { %2717 = vmatmul.mubr.msk.bf16.vlgmr.msra.gmra.mrb[4].mxu1 %vm587_vm7, %v4040_v25 }
 0x3b5   :  { %2744 = vmatpush1.bf16.msk.msra.mxu1 %vm3890_vm9, %v2743_v51  ;;  %v3254_v44 = vpop.permute.xlu1 %3253  ;;  %1604 = vmatprep.mubr.bf16.mxu1 %v3342_v1 }
 0x3b6   :  { %2747 = vmatprep.subr.msk.bf16.mxu1 %vm4013_vm5, %v2746_v37  ;;  %v3256_v11 = vunpack.i.h.bf16 %v3254_v44  ;;  %v3255_v4 = vunpack.i.l.bf16 %v3254_v44  ;;  %vm4692_vm5 = vmmov %vm4690_vm6  ;;  %v2292_v37 = vpop.permute.xlu0 %2291 }
 0x3b7   :  { %vm4693_vm11 = vmmov %vm4692_vm5 }
 0x3b8   :  { %v1886_v54 = vsel %vm4690_vm6, %v3255_v4, %v3250_v23  ;;  %v1887_v25 = vsel %vm4691_vm10, %v3256_v11, %v3251_v61  ;;  %v1878_v9 = vsel %vm4692_vm5, %v3250_v23, %v3255_v4  ;;  %v1879_v50 = vsel %vm4693_vm11, %v3251_v61, %v3256_v11  ;;  %vm4695_vm0 = vmmov %vm4692_vm5 }
 0x3b9   :  { %v2768_v60 = vpack.c.bf16 %v1887_v25, %v1886_v54  ;;  %2750 = vmatpush1.bf16.msk.msra.mxu1 %vm3890_vm9, %v2749_v6  ;;  %v3259_v8 = vpop.permute.xlu1 %3258  ;;  %vm4694_vm9 = vmmov %vm4692_vm5  ;;  %v1910_v16 = vpack.c.bf16 %v1879_v50, %v1878_v9 }
 0x3ba   :  { %v3261_v58 = vunpack.i.h.bf16 %v3259_v8  ;;  %v3260_v53 = vunpack.i.l.bf16 %v3259_v8  ;;  %vm4696_vm3 = vmmov %vm4695_vm0 }
 0x3bb   :  { %2769 = vmatprep.subr.msk.bf16.mxu1 %vm4069_vm12, %v2768_v60  ;;  %vm4697_vm1 = vmmov %vm4695_vm0 }
 0x3bc   :  { %2718 = vmatmul.mubr.msk.bf16.gmra.mrb[8].mxu1 %vm587_vm7, %v4076_v36  ;;  %v1888_v10 = vsel %vm4694_vm9, %v3260_v53, %v3240_v5  ;;  %v1889_v40 = vsel %vm4695_vm0, %v3261_v58, %v3241_v2  ;;  %v1880_v63 = vsel %vm4696_vm3, %v3240_v5, %v3260_v53  ;;  %v1881_v0 = vsel %vm4697_vm1, %v3241_v2, %v3261_v58 }
 0x3bd   :  { %v3279_v59 = vpop.permute.xlu1 %3278  ;;  %1812 = vmatprep.mubr.bf16.mxu1 %v3342_v1  ;;  %v2771_v35 = vpack.c.bf16 %v1889_v40, %v1888_v10  ;;  %v1912_v12 = vpack.c.bf16 %v1881_v0, %v1880_v63 }
 0x3be   :  { %v3281_v41 = vunpack.i.h.bf16 %v3279_v59  ;;  %v3280_v31 = vunpack.i.l.bf16 %v3279_v59 }
 0x3c1   :  { %v3289_v36 = vpop.permute.xlu1 %3288 }
 0x3c2   :  { %v3291_v21 = vunpack.i.h.bf16 %v3289_v36  ;;  %v3290_v57 = vunpack.i.l.bf16 %v3289_v36 }
 0x3c4   :  { %2751 = vmatmul.mubr.msk.bf16.vlgmr.msra.gmra.mrb[4].mxu1 %vm587_vm7, %v4099_v22 }
 0x3c5   :  { %1997 = vmatpush1.bf16.msra.mxu1 %v1910_v16  ;;  %v3294_v43 = vpop.permute.xlu1 %3293  ;;  %1822 = vmatprep.mubr.bf16.mxu1 %v3342_v1 }
 0x3c6   :  { %2772 = vmatprep.subr.msk.bf16.mxu1 %vm4069_vm12, %v2771_v35  ;;  %v3296_v42 = vunpack.i.h.bf16 %v3294_v43  ;;  %v3295_v47 = vunpack.i.l.bf16 %v3294_v43 }
 0x3c8   :  { %v2102_v34 = vsel %vm2089_vm15, %v3295_v47, %v3290_v57  ;;  %v2103_v28 = vsel %vm2089_vm15, %v3296_v42, %v3291_v21  ;;  %v2094_v46 = vsel %vm2089_vm15, %v3290_v57, %v3295_v47  ;;  %v2095_v20 = vsel %vm2089_vm15, %v3291_v21, %v3296_v42 }
 0x3c9   :  { %v2796_v48 = vpack.c.bf16 %v2103_v28, %v2102_v34  ;;  %1999 = vmatpush1.bf16.msra.mxu1 %v1912_v12  ;;  %v3299_v22 = vpop.permute.xlu1 %3298  ;;  %v2799_v32 = vpack.c.bf16 %v2095_v20, %v2094_v46 }
 0x3ca   :  { %v3301_v56 = vunpack.i.h.bf16 %v3299_v22  ;;  %v3300_v49 = vunpack.i.l.bf16 %v3299_v22 }
 0x3cb   :  { %2797 = vmatprep.subr.msk.bf16.mxu1 %vm4139_vm14, %v2796_v48 }
 0x3cc   :  { %2752 = vmatmul.mubr.msk.bf16.gmra.mrb[8].mxu1 %vm587_vm7, %v4146_v18  ;;  %v2104_v45 = vsel %vm2089_vm15, %v3300_v49, %v3280_v31  ;;  %v2105_v26 = vsel %vm2089_vm15, %v3301_v56, %v3281_v41  ;;  %v2096_v18 = vsel %vm2089_vm15, %v3280_v31, %v3300_v49  ;;  %v2097_v29 = vsel %vm2089_vm15, %v3281_v41, %v3301_v56 }
 0x3cd   :  { %2028 = vmatprep.mubr.bf16.mxu1 %v3342_v1  ;;  %v2802_v17 = vpack.c.bf16 %v2105_v26, %v2104_v45  ;;  %v2805_v14 = vpack.c.bf16 %v2097_v29, %v2096_v18 }
 0x3d4   :  { %2773 = vmatmul.mubr.msk.bf16.vlgmr.msra.gmra.mrb[4].mxu1 %vm587_vm7, %v4175_v24 }
 0x3d5   :  { %2800 = vmatpush1.bf16.msk.msra.mxu1 %vm3988_vm13, %v2799_v32  ;;  %2038 = vmatprep.mubr.bf16.mxu1 %v3342_v1 }
 0x3d6   :  { %2803 = vmatprep.subr.msk.bf16.mxu1 %vm4139_vm14, %v2802_v17 }
 0x3d9   :  { %2806 = vmatpush1.bf16.msk.msra.mxu1 %vm3988_vm13, %v2805_v14 }
 0x3db   :  { %v2287_v19 = vpop.permute.xlu1 %2286 }
 0x3dc   :  { %2774 = vmatmul.mubr.msk.bf16.gmra.mrb[8].mxu1 %vm587_vm7, %v4208_v27 }
 0x3dd   :  { %2246 = vmatprep.mubr.bf16.mxu1 %v3342_v1 }
 0x3df   :  { %v2297_v25 = vpop.permute.xlu1 %2296 }
 0x3e4   :  { %2807 = vmatmul.mubr.msk.bf16.vlgmr.msra.gmra.mrb[4].mxu1 %vm587_vm7, %v4235_v30 }
 0x3e5   :  { %2256 = vmatprep.mubr.bf16.mxu1 %v3342_v1 }
 0x3ec   :  { %2808 = vmatmul.mubr.msk.bf16.gmra.mrb[8].mxu1 %vm587_vm7, %v4254_v39 }
 0x449   :  { %v2187_v33 = vpop.f32.mrb[8].mxu0 }
 0x44a   :  { %v4446_v24 = vadd.f32 %v2282_v15, %v2187_v33  ;;  %v2189_v7 = vpop.f32.mrb[9].mxu0 }
 0x44b   :  { %v4448_v62 = vadd.f32 %v2282_v15, %v2189_v7  ;;  %v2191_v3 = vpop.f32.mrb[10].mxu0 }
 0x44c   :  { %v4450_v27 = vadd.f32 %v2287_v19, %v2191_v3  ;;  %v2193_v52 = vpop.f32.mrb[11].mxu0  ;;  %v2339_v55 = vmul.f32 %v4446_v24, %v4446_v24 }
 0x44d   :  { %v4452_v13 = vadd.f32 %v2287_v19, %v2193_v52  ;;  %v2315_v1 = vadd.f32 %v4448_v62, %v4446_v24  ;;  %v2340_v38 = vmul.f32 %v4448_v62, %v4448_v62 }
 0x44e   :  { %v2341_v30 = vmul.f32 %v4450_v27, %v4450_v27 }
 0x44f   :  { %2316 = vadd.xlane.f32.xlu0 %v2315_v1  ;;  %v2318_v39 = vadd.f32 %v4452_v13, %v4450_v27  ;;  %v2342_v51 = vmul.f32 %v4452_v13, %v4452_v13  ;;  %v2355_v54 = vadd.f32 %v2340_v38, %v2339_v55 }
 0x451   :  { %2319 = vadd.xlane.f32.xlu1 %v2318_v39  ;;  %v2197_v44 = vpop.f32.mrb[12].mxu0  ;;  %v2358_v61 = vadd.f32 %v2342_v51, %v2341_v30 }
 0x452   :  { %v4466_v23 = vadd.f32 %v2292_v37, %v2197_v44  ;;  %v2199_v11 = vpop.f32.mrb[13].mxu0 }
 0x453   :  { %v4468_v4 = vadd.f32 %v2292_v37, %v2199_v11  ;;  %2359 = vadd.xlane.f32.xlu0 %v2358_v61  ;;  %v2201_v6 = vpop.f32.mrb[14].mxu0 }
 0x454   :  { %v2203_v60 = vpop.f32.mrb[15].mxu0  ;;  %v2343_v8 = vmul.f32 %v4466_v23, %v4466_v23  ;;  %v4472_v58 = vadd.f32 %v2297_v25, %v2201_v6 }
 0x455   :  { %v4474_v53 = vadd.f32 %v2297_v25, %v2203_v60  ;;  %2356 = vadd.xlane.f32.xlu1 %v2355_v54  ;;  %v2321_v59 = vadd.f32 %v4468_v4, %v4466_v23  ;;  %v2344_v2 = vmul.f32 %v4468_v4, %v4468_v4 }
 0x456   :  { %v2345_v9 = vmul.f32 %v4472_v58, %v4472_v58 }
 0x457   :  { %2322 = vadd.xlane.f32.xlu0 %v2321_v59  ;;  %v2361_v5 = vadd.f32 %v2344_v2, %v2343_v8  ;;  %v2346_v50 = vmul.f32 %v4474_v53, %v4474_v53  ;;  %v2324_v10 = vadd.f32 %v4474_v53, %v4472_v58 }
 0x459   :  { %2362 = vadd.xlane.f32.xlu1 %v2361_v5  ;;  %v2364_v40 = vadd.f32 %v2346_v50, %v2345_v9 }
 0x45b   :  { %2325 = vadd.xlane.f32.xlu0 %v2324_v10 }
 0x45f   :  { %2365 = vadd.xlane.f32.xlu0 %v2364_v40 }
 0x4b7   :  { %v2248_v36 = vpop.f32.mrb[4].mxu1 }
 0x4b8   :  { %v4486_v16 = vadd.f32 %v2282_v15, %v2248_v36  ;;  %v2250_v63 = vpop.f32.mrb[5].mxu1 }
 0x4b9   :  { %v4488_v0 = vadd.f32 %v2282_v15, %v2250_v63  ;;  %v2252_v35 = vpop.f32.mrb[6].mxu1 }
 0x4ba   :  { %v4490_v43 = vadd.f32 %v2287_v19, %v2252_v35  ;;  %v2254_v21 = vpop.f32.mrb[7].mxu1  ;;  %v2347_v57 = vmul.f32 %v4486_v16, %v4486_v16 }
 0x4bb   :  { %v2348_v42 = vmul.f32 %v4488_v0, %v4488_v0  ;;  %v4496_v47 = vadd.f32 %v2287_v19, %v2254_v21  ;;  %v2327_v12 = vadd.f32 %v4488_v0, %v4486_v16 }
 0x4bc   :  { %v2349_v34 = vmul.f32 %v4490_v43, %v4490_v43 }
 0x4bd   :  { %v2350_v28 = vmul.f32 %v4496_v47, %v4496_v47  ;;  %2328 = vadd.xlane.f32.xlu1 %v2327_v12  ;;  %v2330_v48 = vadd.f32 %v4496_v47, %v4490_v43  ;;  %v2367_v56 = vadd.f32 %v2348_v42, %v2347_v57 }
 0x4bf   :  { %v2258_v22 = vpop.f32.mrb[8].mxu1  ;;  %2331 = vadd.xlane.f32.xlu0 %v2330_v48  ;;  %v2370_v20 = vadd.f32 %v2350_v28, %v2349_v34 }
 0x4c0   :  { %v4506_v49 = vadd.f32 %v2292_v37, %v2258_v22  ;;  %v2260_v41 = vpop.f32.mrb[9].mxu1 }
 0x4c1   :  { %v4508_v31 = vadd.f32 %v2292_v37, %v2260_v41  ;;  %v2262_v46 = vpop.f32.mrb[10].mxu1  ;;  %2368 = vadd.xlane.f32.xlu1 %v2367_v56 }
 0x4c2   :  { %v4510_v45 = vadd.f32 %v2297_v25, %v2262_v46  ;;  %v2264_v26 = vpop.f32.mrb[11].mxu1  ;;  %v2351_v32 = vmul.f32 %v4506_v49, %v4506_v49 }
 0x4c3   :  { %v2352_v18 = vmul.f32 %v4508_v31, %v4508_v31  ;;  %v4516_v29 = vadd.f32 %v2297_v25, %v2264_v26  ;;  %2371 = vadd.xlane.f32.xlu0 %v2370_v20  ;;  %v2333_v17 = vadd.f32 %v4508_v31, %v4506_v49 }
 0x4c4   :  { %v2353_v14 = vmul.f32 %v4510_v45, %v4510_v45 }
 0x4c5   :  { %v2354_v15 = vmul.f32 %v4516_v29, %v4516_v29  ;;  %2334 = vadd.xlane.f32.xlu1 %v2333_v17  ;;  %v2336_v33 = vadd.f32 %v4516_v29, %v4510_v45  ;;  %v2373_v7 = vadd.f32 %v2352_v18, %v2351_v32 }
 0x4c7   :  { %2337 = vadd.xlane.f32.xlu0 %v2336_v33  ;;  %v2376_v19 = vadd.f32 %v2354_v15, %v2353_v14 }
 0x4c9   :  { %2374 = vadd.xlane.f32.xlu1 %v2373_v7 }
 0x4cb   :  { %2377 = vadd.xlane.f32.xlu0 %v2376_v19 }
 0x4dc   :  { %v2317_v3 = vpop.xlane.xlu0 %2316 }
 0x4de   :  { %v2320_v1 = vpop.xlane.xlu1 %2319 }
 0x4e0   :  { %v2360_v52 = vpop.xlane.xlu0 %2359 }
 0x4e2   :  { %v2357_v39 = vpop.xlane.xlu1 %2356 }
 0x4e4   :  { %v2323_v30 = vpop.xlane.xlu0 %2322 }
 0x4e6   :  { %v2363_v55 = vpop.xlane.xlu1 %2362 }
 0x4e8   :  { %v2326_v51 = vpop.xlane.xlu0 %2325 }
 0x4ec   :  { %v2366_v38 = vpop.xlane.xlu0 %2365 }
 0x54a   :  { %v2329_v37 = vpop.xlane.xlu1 %2328 }
 0x54b   :  { %v2379_v44 = vadd.f32 %v2329_v37, %v2317_v3  ;;  %v2415_v3 = vld [vmem:[%s4622_s8] sm:$0xff]  ;;  %v2424_v37 = vld [vmem:[%s4623_s9 + $0x8] sm:$0xff] }
 0x54c   :  { %v2332_v61 = vpop.xlane.xlu0 %2331 }
 0x54d   :  { %v2387_v11 = vmul.f32 0.001953125, %v2379_v44  ;;  %v2380_v6 = vadd.f32 %v2332_v61, %v2320_v1  ;;  %v2416_v1 = vld [vmem:[%s4622_s8 + $0x8] sm:$0xff] }
 0x54e   :  { %v2369_v54 = vpop.xlane.xlu1 %2368 }
 0x54f   :  { %v2388_v25 = vmul.f32 0.001953125, %v2380_v6  ;;  %v2383_v60 = vadd.f32 %v2369_v54, %v2357_v39  ;;  %v2395_v59 = vmul.f32 %v2387_v11, %v2387_v11  ;;  %v2417_v54 = vld [vmem:[%s4622_s8 + $0x10] sm:$0xff] }
 0x550   :  { %v2372_v8 = vpop.xlane.xlu0 %2371 }
 0x551   :  { %v2391_v2 = vmul.f32 0.001953125, %v2383_v60  ;;  %v2384_v5 = vadd.f32 %v2372_v8, %v2360_v52  ;;  %v2396_v50 = vmul.f32 %v2388_v25, %v2388_v25 }
 0x552   :  { %v2335_v9 = vpop.xlane.xlu1 %2334 }
 0x553   :  { %v2399_v10 = vsub.f32 %v2391_v2, %v2395_v59  ;;  %v2392_v40 = vmul.f32 0.001953125, %v2384_v5  ;;  %v2381_v36 = vadd.f32 %v2335_v9, %v2323_v30  ;;  %v2425_v2 = vld [vmem:[%s4623_s9 + $0x10] sm:$0xff] }
 0x554   :  { %v2338_v63 = vpop.xlane.xlu0 %2337 }
 0x555   :  { %v2403_v35 = vmax.f32 %v2399_v10, 0.0  ;;  %v2400_v21 = vsub.f32 %v2392_v40, %v2396_v50  ;;  %v2382_v57 = vadd.f32 %v2338_v63, %v2326_v51  ;;  %v2389_v42 = vmul.f32 0.001953125, %v2381_v36  ;;  %v2426_v10 = vld [vmem:[%s4623_s9 + $0x18] sm:$0xff] }
 0x556   :  { %v2375_v12 = vpop.xlane.xlu1 %2374 }
 0x557   :  { %v2407_v34 = vadd.f32 1e-05, %v2403_v35  ;;  %v2404_v28 = vmax.f32 %v2400_v21, 0.0  ;;  %v2390_v48 = vmul.f32 0.001953125, %v2382_v57  ;;  %v2385_v22 = vadd.f32 %v2375_v12, %v2363_v55 }
 0x558   :  { %v2378_v56 = vpop.xlane.xlu0 %2377  ;;  %v2397_v20 = vmul.f32 %v2389_v42, %v2389_v42 }
 0x559   :  { %3334 = vrsqrt.f32 %v2407_v34  ;;  %v2408_v41 = vadd.f32 1e-05, %v2404_v28  ;;  %v2386_v46 = vadd.f32 %v2378_v56, %v2366_v38  ;;  %v2393_v26 = vmul.f32 0.001953125, %v2385_v22  ;;  %v2423_v38 = vld [vmem:[%s4623_s9] sm:$0xff] }
 0x55a   :  { %v2398_v32 = vmul.f32 %v2390_v48, %v2390_v48 }
 0x55b   :  { %3336 = vrsqrt.f32 %v2408_v41  ;;  %v2394_v18 = vmul.f32 0.001953125, %v2386_v46  ;;  %v2401_v17 = vsub.f32 %v2393_v26, %v2397_v20 }
 0x55d   :  { %v2402_v14 = vsub.f32 %v2394_v18, %v2398_v32  ;;  %v2405_v15 = vmax.f32 %v2401_v17, 0.0 }
 0x55f   :  { %v2406_v33 = vmax.f32 %v2402_v14, 0.0  ;;  %v2409_v7 = vadd.f32 1e-05, %v2405_v15 }
 0x561   :  { %v2410_v19 = vadd.f32 1e-05, %v2406_v33  ;;  %3338 = vrsqrt.f32 %v2409_v7 }
 0x563   :  { %v3335_v52 = vpop.eup %3334  ;;  %3340 = vrsqrt.f32 %v2410_v19 }
 0x564   :  { %v2419_v30 = vmul.f32 %v3335_v52, %v2415_v3 }
 0x565   :  { %v3337_v39 = vpop.eup %3336 }
 0x566   :  { %2437 = vperm.xlu1 %2981, %v2419_v30   ;;  %v2420_v51 = vmul.f32 %v3337_v39, %v2416_v1  ;;  %v2427_v55 = vmul.f32 %v2419_v30, %v2387_v11  ;;  %v2418_v11 = vld [vmem:[%s4622_s8 + $0x18] sm:$0xff] }
 0x568   :  { %2442 = vperm.xlu0 %2980, %v2420_v51   ;;  %v2428_v44 = vmul.f32 %v2420_v51, %v2388_v25  ;;  %v2431_v61 = vsub.f32 %v2423_v38, %v2427_v55 }
 0x56a   :  { %v2432_v6 = vsub.f32 %v2424_v37, %v2428_v44 }
 0x56b   :  { %v3339_v60 = vpop.eup %3338 }
 0x56c   :  { %2473 = vperm.xlu0 %2980, %v2431_v61   ;;  %2478 = vperm.xlu1 %2981, %v2432_v6   ;;  %v2421_v59 = vmul.f32 %v3339_v60, %v2417_v54 }
 0x56d   :  { %v3341_v8 = vpop.eup %3340 }
 0x56e   :  { %v2422_v25 = vmul.f32 %v3341_v8, %v2418_v11  ;;  %v2429_v5 = vmul.f32 %v2421_v59, %v2389_v42 }
 0x570   :  { %2447 = vperm.xlu1 %2981, %v2421_v59   ;;  %v2433_v9 = vsub.f32 %v2425_v2, %v2429_v5  ;;  %v2430_v50 = vmul.f32 %v2422_v25, %v2390_v48 }
 0x572   :  { %2483 = vperm.xlu0 %2980, %v2433_v9   ;;  %v2434_v40 = vsub.f32 %v2426_v10, %v2430_v50 }
 0x574   :  { %2452 = vperm.xlu1 %2981, %v2422_v25  }
 0x578   :  { %2488 = vperm.xlu1 %2981, %v2434_v40  }
 0x5e5   :  { %v2438_v36 = vpop.permute.xlu1 %2437 }
 0x5e6   :  { %v2455_v12 = vmul.f32 %v2438_v36, %v4446_v24  ;;  %v2456_v34 = vmul.f32 %v2438_v36, %v4448_v62  ;;  %v2463_v28 = vmul.f32 %v2438_v36, %v4486_v16  ;;  %v2464_v48 = vmul.f32 %v2438_v36, %v4488_v0 }
 0x5e7   :  { %v2443_v63 = vpop.permute.xlu0 %2442 }
 0x5e8   :  { %v2457_v35 = vmul.f32 %v2443_v63, %v4450_v27  ;;  %v2458_v21 = vmul.f32 %v2443_v63, %v4452_v13  ;;  %v2465_v57 = vmul.f32 %v2443_v63, %v4490_v43  ;;  %v2466_v42 = vmul.f32 %v2443_v63, %v4496_v47 }
 0x5eb   :  { %v2479_v22 = vpop.permute.xlu1 %2478  ;;  %v2474_v56 = vpop.permute.xlu0 %2473 }
 0x5ec   :  { %v2493_v41 = vadd.f32 %v2479_v22, %v2457_v35  ;;  %v2494_v46 = vadd.f32 %v2479_v22, %v2458_v21  ;;  %v2501_v20 = vadd.f32 %v2479_v22, %v2465_v57  ;;  %v2502_v27 = vadd.f32 %v2479_v22, %v2466_v42 }
 0x5ed   :  { %v2491_v26 = vadd.f32 %v2474_v56, %v2455_v12  ;;  %v2492_v13 = vadd.f32 %v2474_v56, %v2456_v34  ;;  %v2499_v32 = vadd.f32 %v2474_v56, %v2463_v28  ;;  %v2500_v43 = vadd.f32 %v2474_v56, %v2464_v48 }
 0x5ee   :  { %v2509_v18 = vmax.f32 %v2493_v41, 0.0  ;;  %v2510_v47 = vmax.f32 %v2494_v46, 0.0  ;;  %v2517_v17 = vmax.f32 %v2501_v20, 0.0  ;;  %v2518_v24 = vmax.f32 %v2502_v27, 0.0 }
 0x5ef   :  { %v2507_v14 = vmax.f32 %v2491_v26, 0.0  ;;  %v2508_v62 = vmax.f32 %v2492_v13, 0.0  ;;  %v2515_v15 = vmax.f32 %v2499_v32, 0.0  ;;  %v2516_v16 = vmax.f32 %v2500_v43, 0.0  ;;  %v2448_v33 = vpop.permute.xlu1 %2447 }
 0x5f0   :  { %2525 = vst [vmem:[%s4624_s10 + $0x10] sm:$0xff] %v2509_v18  ;;  %2526 = vst [vmem:[%s4624_s10 + $0x18] sm:$0xff] %v2510_v47  ;;  %v2459_v0 = vmul.f32 %v2448_v33, %v4466_v23  ;;  %v2460_v7 = vmul.f32 %v2448_v33, %v4468_v4  ;;  %v2467_v19 = vmul.f32 %v2448_v33, %v4506_v49 }
 0x5f1   :  { %2533 = vst [vmem:[%s4624_s10 + $0x50] sm:$0xff] %v2517_v17  ;;  %2534 = vst [vmem:[%s4624_s10 + $0x58] sm:$0xff] %v2518_v24  ;;  %v2468_v3 = vmul.f32 %v2448_v33, %v4508_v31  ;;  %v2484_v23 = vpop.permute.xlu0 %2483 }
 0x5f2   :  { %2523 = vst [vmem:[%s4624_s10] sm:$0xff] %v2507_v14  ;;  %2524 = vst [vmem:[%s4624_s10 + $0x8] sm:$0xff] %v2508_v62  ;;  %v2495_v4 = vadd.f32 %v2484_v23, %v2459_v0  ;;  %v2496_v49 = vadd.f32 %v2484_v23, %v2460_v7  ;;  %v2503_v31 = vadd.f32 %v2484_v23, %v2467_v19 }
 0x5f3   :  { %2531 = vst [vmem:[%s4624_s10 + $0x40] sm:$0xff] %v2515_v15  ;;  %2532 = vst [vmem:[%s4624_s10 + $0x48] sm:$0xff] %v2516_v16  ;;  %v2504_v52 = vadd.f32 %v2484_v23, %v2468_v3  ;;  %v2453_v1 = vpop.permute.xlu1 %2452 }
 0x5f4   :  { %v2511_v30 = vmax.f32 %v2495_v4, 0.0  ;;  %v2512_v39 = vmax.f32 %v2496_v49, 0.0  ;;  %v2519_v51 = vmax.f32 %v2503_v31, 0.0  ;;  %v2461_v38 = vmul.f32 %v2453_v1, %v4472_v58 }
 0x5f5   :  { %v2520_v55 = vmax.f32 %v2504_v52, 0.0  ;;  %v2462_v37 = vmul.f32 %v2453_v1, %v4474_v53  ;;  %v2469_v44 = vmul.f32 %v2453_v1, %v4510_v45  ;;  %v2470_v61 = vmul.f32 %v2453_v1, %v4516_v29 }
 0x5f6   :  { %2527 = vst [vmem:[%s4624_s10 + $0x20] sm:$0xff] %v2511_v30  ;;  %2528 = vst [vmem:[%s4624_s10 + $0x28] sm:$0xff] %v2512_v39 }
 0x5f7   :  { %2535 = vst [vmem:[%s4624_s10 + $0x60] sm:$0xff] %v2519_v51  ;;  %2536 = vst [vmem:[%s4624_s10 + $0x68] sm:$0xff] %v2520_v55  ;;  %v2489_v58 = vpop.permute.xlu1 %2488 }
 0x5f8   :  { %v2497_v53 = vadd.f32 %v2489_v58, %v2461_v38  ;;  %v2498_v45 = vadd.f32 %v2489_v58, %v2462_v37  ;;  %v2505_v29 = vadd.f32 %v2489_v58, %v2469_v44  ;;  %v2506_v6 = vadd.f32 %v2489_v58, %v2470_v61 }
 0x5fa   :  { %v2513_v54 = vmax.f32 %v2497_v53, 0.0  ;;  %v2514_v11 = vmax.f32 %v2498_v45, 0.0  ;;  %v2521_v60 = vmax.f32 %v2505_v29, 0.0  ;;  %v2522_v8 = vmax.f32 %v2506_v6, 0.0 }
 0x5fc   :  { %2529 = vst [vmem:[%s4624_s10 + $0x30] sm:$0xff] %v2513_v54  ;;  %2530 = vst [vmem:[%s4624_s10 + $0x38] sm:$0xff] %v2514_v11 }
 0x5fd   :  { %2537 = vst [vmem:[%s4624_s10 + $0x70] sm:$0xff] %v2521_v60  ;;  %2538 = vst [vmem:[%s4624_s10 + $0x78] sm:$0xff] %v2522_v8 }

</bundles_post_ra>
